<compile_context>
chip_gen: v7x
topology: tpu7x:2x2x1
jax: 0.10.0
libtpu: 0.0.40
codegen_flags: <defaults>
</compile_context>

<pallas_src>
import functools

import jax
import jax.numpy as jnp
import numpy as np
from jax.experimental import pallas as pl
from jax.experimental.pallas import tpu as pltpu


# ----------------------------------------------------------------------------
# Fused forward kernel.
# ----------------------------------------------------------------------------
def _fused_kernel(x_ref, xh_ref, w1_ref, b1_ref,
                  wa_ref, ba_ref, wb_ref, bb_ref, wc_ref, bc_ref,
                  wlstm_ref, blstm_ref, whead_ref, bhead_ref,
                  out_ref, hc_ref, y_sc, *, T, B, H, L):
    f32 = jnp.float32

    # ---- linear1 + ReLU over all timesteps at once: (T*B, Din) @ (Din, H) ----
    h1 = jnp.dot(x_ref[...], w1_ref[...], preferred_element_type=f32)
    h1 = jnp.maximum(h1 + b1_ref[...], 0.0)
    # TODO(synk): nn.Dropout after ReLU is training-only; eval semantics = identity.

    # ---- init_net: 3 fused dense layers on x_h -> z (B, 2*L*H) ----
    z = jnp.dot(xh_ref[...], wa_ref[...], preferred_element_type=f32) + ba_ref[...]
    z = jnp.maximum(z, 0.0)
    z = jnp.dot(z, wb_ref[...], preferred_element_type=f32) + bb_ref[...]
    z = jnp.maximum(z, 0.0)
    z = jnp.dot(z, wc_ref[...], preferred_element_type=f32) + bc_ref[...]

    # ---- replicate torch .view(2, L, B, H) of the flat (B, 2*L*H) buffer ----
    # Kept as static slices + sublane concats (robust Mosaic lowering; a
    # lane->sublane reshape of z risks a relayout that may not lower cleanly).
    # This is prologue work that overlaps with the hoisted gates0_x matmul.
    h_st, c_st = [], []
    for l in range(L):
        rows_h, rows_c = [], []
        for b in range(B):
            qh = l * B + b
            qc = L * B + l * B + b
            rh, ch = qh // (2 * L), (qh % (2 * L)) * H
            rc, cc = qc // (2 * L), (qc % (2 * L)) * H
            rows_h.append(z[rh:rh + 1, ch:ch + H])
            rows_c.append(z[rc:rc + 1, cc:cc + H])
        h_st.append(jnp.concatenate(rows_h, axis=0))   # (B, H)
        c_st.append(jnp.concatenate(rows_c, axis=0))   # (B, H)

    # ---- layer-0 input matmul hoisted out of the time loop (M = T*B rows) ----
    wl0 = wlstm_ref[0]                                              # (2H, 4H)
    gates0_x = (jnp.dot(h1, wl0[:H, :], preferred_element_type=f32)
                + blstm_ref[0])                                     # (T*B, 4H)

    # ---- gate lane mask hoisted out of the unrolled loops ----
    lane = jax.lax.broadcasted_iota(jnp.int32, (B, 4 * H), 1)
    is_g = jnp.logical_and(lane >= 2 * H, lane < 3 * H)

    # ---- LSTM recurrence, fully unrolled in-kernel (T, L static) ----
    # i/f/o weight columns were pre-scaled by 0.5, so sigmoid(a) = 0.5*tanh(a/2)+0.5
    # -> one tanh EUP push per cell for the gates instead of sigmoid + tanh.
    for t in range(T):
        x_in = None
        for l in range(L):
            if l == 0:
                gates = (gates0_x[t * B:(t + 1) * B, :]
                         + jnp.dot(h_st[0], wl0[H:, :],
                                   preferred_element_type=f32))     # (B, 4H)
            else:
                # TODO(synk): on v7x the MRB makes two accumulating matmuls
                # (x_in@Wih + h@Whh) preferable to this lane-concat.
                xcat = jnp.concatenate([x_in, h_st[l]], axis=1)      # (B, 2H)
                gates = (jnp.dot(xcat, wlstm_ref[l],
                                 preferred_element_type=f32)
                         + blstm_ref[l])                             # (B, 4H)
            th = jnp.tanh(gates)
            act = jnp.where(is_g, th, 0.5 * th + 0.5)
            i_g = act[:, 0:H]
            f_g = act[:, H:2 * H]
            g_g = act[:, 2 * H:3 * H]
            o_g = act[:, 3 * H:4 * H]
            c_new = f_g * c_st[l] + i_g * g_g
            h_new = o_g * jnp.tanh(c_new)
            h_st[l] = h_new
            c_st[l] = c_new
            # TODO(synk): nn.LSTM inter-layer dropout is training-only; eval = identity.
            x_in = h_new
        # write this step's output straight into VMEM scratch (no ys concat)
        y_sc[t * B:(t + 1) * B, :] = x_in

    # ---- merged, lane-padded pose/logstd heads: one (T*B, H)@(H, 128) matmul ----
    heads = (jnp.dot(y_sc[...], whead_ref[...], preferred_element_type=f32)
             + bhead_ref[...])                                      # (T*B, 128)
    out_ref[...] = heads.astype(out_ref.dtype)

    # ---- final hidden / cell state, single merged output ----
    for l in range(L):
        hc_ref[l] = h_st[l].astype(hc_ref.dtype)
        hc_ref[L + l] = c_st[l].astype(hc_ref.dtype)


# ----------------------------------------------------------------------------
# One-time parameter preparation (pre-transpose / pre-stack / pre-scale).
# ----------------------------------------------------------------------------
def prepare_kernel_params(params):
    H = params["W1"].shape[0]
    L = params["Wih"].shape[0]
    out = params["Wp"].shape[0]
    out2 = 2 * out
    out_pad = ((out2 + 127) // 128) * 128

    # sigmoid(a) = 0.5*tanh(a/2) + 0.5  -> pre-scale i/f/o gate columns by 0.5
    # (PyTorch gate order i, f, g, o; g keeps its plain tanh).
    gscale = jnp.concatenate([
        jnp.full((2 * H,), 0.5, jnp.float32),   # i, f
        jnp.ones((H,), jnp.float32),            # g
        jnp.full((H,), 0.5, jnp.float32),       # o
    ])

    wih_t = jnp.transpose(params["Wih"], (0, 2, 1))              # (L, H, 4H)
    whh_t = jnp.transpose(params["Whh"], (0, 2, 1))              # (L, H, 4H)
    wlstm = jnp.concatenate([wih_t, whh_t], axis=1) * gscale     # (L, 2H, 4H)
    blstm = ((params["bih"] + params["bhh"]) * gscale).reshape(L, 1, 4 * H)

    whead = jnp.concatenate([params["Wp"].T, params["Wl"].T], axis=1)  # (H, 2*out)
    bhead = jnp.concatenate([params["bp"], params["bl"]])
    whead = jnp.pad(whead, ((0, 0), (0, out_pad - out2)))        # lane-dense 128
    bhead = jnp.pad(bhead, (0, out_pad - out2)).reshape(1, -1)

    return {
        "W1t": params["W1"].T, "b1": params["b1"].reshape(1, -1),
        "Wat": params["Wa"].T, "ba": params["ba"].reshape(1, -1),
        "Wbt": params["Wb"].T, "bb": params["bb"].reshape(1, -1),
        "Wct": params["Wc"].T, "bc": params["bc"].reshape(1, -1),
        "Wlstm": wlstm, "blstm": blstm,
        "Whead": whead, "bhead": bhead,
        "out2": out2,                      # true (unpadded) head width
    }


# ----------------------------------------------------------------------------
# Forward wrapper: single pallas_call, everything VMEM-resident, no grid.
# ----------------------------------------------------------------------------
def pose_estimator_forward(kp, x, x_h):
    """x: (B, T, input_size), x_h: (B, input_hidden_size)."""
    B, T, Din = x.shape
    H = kp["W1t"].shape[1]
    L = kp["Wlstm"].shape[0]
    out2 = kp["out2"]
    out = out2 // 2
    out_pad = kp["Whead"].shape[1]

    # present the sequence time-major so per-timestep rows are contiguous
    x_tb = jnp.transpose(x, (1, 0, 2)).reshape(T * B, Din)

    kernel = functools.partial(_fused_kernel, T=T, B=B, H=H, L=L)
    vmem_spec = lambda: pl.BlockSpec(memory_space=pltpu.MemorySpace.VMEM)

    heads, hc = pl.pallas_call(
        kernel,
        out_shape=(
            jax.ShapeDtypeStruct((T * B, out_pad), x.dtype),
            jax.ShapeDtypeStruct((2 * L, B, H), x.dtype),
        ),
        in_specs=[vmem_spec() for _ in range(14)],
        out_specs=(vmem_spec(), vmem_spec()),
        scratch_shapes=[pltpu.VMEM((T * B, H), jnp.float32)],
    )(x_tb, x_h, kp["W1t"], kp["b1"], kp["Wat"], kp["ba"], kp["Wbt"], kp["bb"],
      kp["Wct"], kp["bc"], kp["Wlstm"], kp["blstm"], kp["Whead"], kp["bhead"])

    heads = jnp.transpose(heads[:, :out2].reshape(T, B, out2), (1, 0, 2))
    pose = jnp.squeeze(heads[..., :out])
    logstd = jnp.squeeze(heads[..., out:])
    hT, cT = hc[:L], hc[L:]
    return pose, logstd, hT, cT


# ----------------------------------------------------------------------------
# Parameter init (deterministic, PyTorch parameter shapes).
# ----------------------------------------------------------------------------
def init_params(key, input_size, input_hidden_size, output_size, hidden_size,
                num_layers):
    def u(k, shape, scale=0.1):
        return jax.random.uniform(k, shape, jnp.float32, -scale, scale)

    ks = iter(jax.random.split(key, 32))
    H, L = hidden_size, num_layers
    return {
        # linear1
        "W1": u(next(ks), (H, input_size)), "b1": u(next(ks), (H,)),
        # LSTM (PyTorch gate order i, f, g, o)
        "Wih": u(next(ks), (L, 4 * H, H)), "Whh": u(next(ks), (L, 4 * H, H)),
        "bih": u(next(ks), (L, 4 * H)), "bhh": u(next(ks), (L, 4 * H)),
        # heads
        "Wp": u(next(ks), (output_size, H)), "bp": u(next(ks), (output_size,)),
        "Wl": u(next(ks), (output_size, H)), "bl": u(next(ks), (output_size,)),
        # init_net: Linear(in_h,H) ReLU Linear(H,H*L) ReLU Linear(H*L, H*L*2)
        "Wa": u(next(ks), (H, input_hidden_size)), "ba": u(next(ks), (H,)),
        "Wb": u(next(ks), (H * L, H)), "bb": u(next(ks), (H * L,)),
        "Wc": u(next(ks), (H * L * 2, H * L)), "bc": u(next(ks), (H * L * 2,)),
    }


# ----------------------------------------------------------------------------
# Pure-JAX reference for verification (PyTorch semantics).
# ----------------------------------------------------------------------------
def ref_forward(params, x, x_h):
    relu = lambda v: jnp.maximum(v, 0.0)
    sig = jax.nn.sigmoid
    B, T, _ = x.shape
    H = params["W1"].shape[0]
    L = params["Wih"].shape[0]

    h1 = relu(x @ params["W1"].T + params["b1"])
    z = relu(x_h @ params["Wa"].T + params["ba"])
    z = relu(z @ params["Wb"].T + params["bb"])
    z = z @ params["Wc"].T + params["bc"]
    hc = z.reshape(2, L, B, H)                      # == torch .view(2, L, B, H)
    hs = [hc[0, l] for l in range(L)]
    cs = [hc[1, l] for l in range(L)]

    ys = []
    for t in range(T):
        inp = h1[:, t, :]
        for l in range(L):
            g = (inp @ params["Wih"][l].T + params["bih"][l]
                 + hs[l] @ params["Whh"][l].T + params["bhh"][l])
            i_g, f_g, g_g, o_g = (g[:, :H], g[:, H:2 * H],
                                  g[:, 2 * H:3 * H], g[:, 3 * H:])
            c = sig(f_g) * cs[l] + sig(i_g) * jnp.tanh(g_g)
            h = sig(o_g) * jnp.tanh(c)
            hs[l], cs[l] = h, c
            inp = h
        ys.append(inp)
    y = jnp.stack(ys, axis=1)
    pose = jnp.squeeze(y @ params["Wp"].T + params["bp"])
    logstd = jnp.squeeze(y @ params["Wl"].T + params["bl"])
    return pose, logstd


if __name__ == "__main__":
    # Small shapes implied by the module's forward.
    B, T = 2, 8
    input_size, input_hidden_size = 12, 16
    hidden_size, output_size, num_layers = 32, 6, 2

    key = jax.random.PRNGKey(0)
    kx, kh, kpk = jax.random.split(key, 3)
    x = jax.random.normal(kx, (B, T, input_size), jnp.float32)
    x_h = jax.random.normal(kh, (B, input_hidden_size), jnp.float32)
    params = init_params(kpk, input_size, input_hidden_size, output_size,
                         hidden_size, num_layers)
    kparams = prepare_kernel_params(params)   # one-time transpose/scale/pad

    pose, logstd, hT, cT = pose_estimator_forward(kparams, x, x_h)
    jax.block_until_ready((pose, logstd, hT, cT))

    ref_pose, ref_logstd = ref_forward(params, x, x_h)
    np.testing.assert_allclose(np.asarray(pose), np.asarray(ref_pose),
                               rtol=1e-5, atol=1e-5)
    np.testing.assert_allclose(np.asarray(logstd), np.asarray(ref_logstd),
                               rtol=1e-5, atol=1e-5)

    print("KERNEL_OK")
</pallas_src>

<mosaic_0001>
module attributes {stable_mosaic.version = 11 : i64} {
  func.func @_fused_kernel(%arg0: memref<16x12xf32, #tpu.memory_space<vmem>>, %arg1: memref<2x16xf32, #tpu.memory_space<vmem>>, %arg2: memref<12x32xf32, #tpu.memory_space<vmem>>, %arg3: memref<1x32xf32, #tpu.memory_space<vmem>>, %arg4: memref<16x32xf32, #tpu.memory_space<vmem>>, %arg5: memref<1x32xf32, #tpu.memory_space<vmem>>, %arg6: memref<32x64xf32, #tpu.memory_space<vmem>>, %arg7: memref<1x64xf32, #tpu.memory_space<vmem>>, %arg8: memref<64x128xf32, #tpu.memory_space<vmem>>, %arg9: memref<1x128xf32, #tpu.memory_space<vmem>>, %arg10: memref<2x64x128xf32, #tpu.memory_space<vmem>>, %arg11: memref<2x1x128xf32, #tpu.memory_space<vmem>>, %arg12: memref<32x128xf32, #tpu.memory_space<vmem>>, %arg13: memref<1x128xf32, #tpu.memory_space<vmem>>, %arg14: memref<16x128xf32, #tpu.memory_space<vmem>>, %arg15: memref<4x2x32xf32, #tpu.memory_space<vmem>>, %arg16: memref<16x32xf32, #tpu.memory_space<vmem>>) attributes {dimension_semantics = [], scalar_prefetch = 0 : i64, scratch_operands = 1 : i64, tpu.core_type = #tpu.core_type<tc>} {
    %c0 = arith.constant 0 : index
    %c0_0 = arith.constant 0 : index
    %0 = vector.load %arg0[%c0, %c0_0] : memref<16x12xf32, #tpu.memory_space<vmem>>, vector<16x12xf32>
    %c0_1 = arith.constant 0 : index
    %c0_2 = arith.constant 0 : index
    %1 = vector.load %arg2[%c0_1, %c0_2] : memref<12x32xf32, #tpu.memory_space<vmem>>, vector<12x32xf32>
    %cst = arith.constant dense<0.000000e+00> : vector<16x32xf32>
    %2 = tpu.matmul %0, %1, %cst {dimension_numbers = #tpu.dot_dimension_numbers<[1], [0], [0], [1], [0, 0, 1, 1], [], []>} : vector<16x12xf32>, vector<12x32xf32>, vector<16x32xf32> -> vector<16x32xf32>
    %c0_3 = arith.constant 0 : index
    %c0_4 = arith.constant 0 : index
    %3 = vector.load %arg3[%c0_3, %c0_4] : memref<1x32xf32, #tpu.memory_space<vmem>>, vector<1x32xf32>
    %4 = vector.broadcast %3 : vector<1x32xf32> to vector<16x32xf32>
    %5 = arith.addf %2, %4 : vector<16x32xf32>
    %cst_5 = arith.constant 0.000000e+00 : f32
    %6 = vector.broadcast %cst_5 : f32 to vector<16x32xf32>
    %7 = arith.maximumf %5, %6 : vector<16x32xf32>
    %c0_6 = arith.constant 0 : index
    %c0_7 = arith.constant 0 : index
    %8 = vector.load %arg1[%c0_6, %c0_7] : memref<2x16xf32, #tpu.memory_space<vmem>>, vector<2x16xf32>
    %c0_8 = arith.constant 0 : index
    %c0_9 = arith.constant 0 : index
    %9 = vector.load %arg4[%c0_8, %c0_9] : memref<16x32xf32, #tpu.memory_space<vmem>>, vector<16x32xf32>
    %cst_10 = arith.constant dense<0.000000e+00> : vector<2x32xf32>
    %10 = tpu.matmul %8, %9, %cst_10 {dimension_numbers = #tpu.dot_dimension_numbers<[1], [0], [0], [1], [0, 0, 1, 1], [], []>} : vector<2x16xf32>, vector<16x32xf32>, vector<2x32xf32> -> vector<2x32xf32>
    %c0_11 = arith.constant 0 : index
    %c0_12 = arith.constant 0 : index
    %11 = vector.load %arg5[%c0_11, %c0_12] : memref<1x32xf32, #tpu.memory_space<vmem>>, vector<1x32xf32>
    %12 = vector.broadcast %11 : vector<1x32xf32> to vector<2x32xf32>
    %13 = arith.addf %10, %12 : vector<2x32xf32>
    %cst_13 = arith.constant 0.000000e+00 : f32
    %14 = vector.broadcast %cst_13 : f32 to vector<2x32xf32>
    %15 = arith.maximumf %13, %14 : vector<2x32xf32>
    %c0_14 = arith.constant 0 : index
    %c0_15 = arith.constant 0 : index
    %16 = vector.load %arg6[%c0_14, %c0_15] : memref<32x64xf32, #tpu.memory_space<vmem>>, vector<32x64xf32>
    %cst_16 = arith.constant dense<0.000000e+00> : vector<2x64xf32>
    %17 = tpu.matmul %15, %16, %cst_16 {dimension_numbers = #tpu.dot_dimension_numbers<[1], [0], [0], [1], [0, 0, 1, 1], [], []>} : vector<2x32xf32>, vector<32x64xf32>, vector<2x64xf32> -> vector<2x64xf32>
    %c0_17 = arith.constant 0 : index
    %c0_18 = arith.constant 0 : index
    %18 = vector.load %arg7[%c0_17, %c0_18] : memref<1x64xf32, #tpu.memory_space<vmem>>, vector<1x64xf32>
    %19 = vector.broadcast %18 : vector<1x64xf32> to vector<2x64xf32>
    %20 = arith.addf %17, %19 : vector<2x64xf32>
    %cst_19 = arith.constant 0.000000e+00 : f32
    %21 = vector.broadcast %cst_19 : f32 to vector<2x64xf32>
    %22 = arith.maximumf %20, %21 : vector<2x64xf32>
    %c0_20 = arith.constant 0 : index
    %c0_21 = arith.constant 0 : index
    %23 = vector.load %arg8[%c0_20, %c0_21] : memref<64x128xf32, #tpu.memory_space<vmem>>, vector<64x128xf32>
    %cst_22 = arith.constant dense<0.000000e+00> : vector<2x128xf32>
    %24 = tpu.matmul %22, %23, %cst_22 {dimension_numbers = #tpu.dot_dimension_numbers<[1], [0], [0], [1], [0, 0, 1, 1], [], []>} : vector<2x64xf32>, vector<64x128xf32>, vector<2x128xf32> -> vector<2x128xf32>
    %c0_23 = arith.constant 0 : index
    %c0_24 = arith.constant 0 : index
    %25 = vector.load %arg9[%c0_23, %c0_24] : memref<1x128xf32, #tpu.memory_space<vmem>>, vector<1x128xf32>
    %26 = vector.broadcast %25 : vector<1x128xf32> to vector<2x128xf32>
    %27 = arith.addf %24, %26 : vector<2x128xf32>
    %28 = vector.extract_strided_slice %27 {offsets = [0, 0], sizes = [1, 32], strides = [1, 1]} : vector<2x128xf32> to vector<1x32xf32>
    %29 = vector.extract_strided_slice %27 {offsets = [1, 0], sizes = [1, 32], strides = [1, 1]} : vector<2x128xf32> to vector<1x32xf32>
    %30 = vector.extract_strided_slice %27 {offsets = [0, 32], sizes = [1, 32], strides = [1, 1]} : vector<2x128xf32> to vector<1x32xf32>
    %31 = vector.extract_strided_slice %27 {offsets = [1, 32], sizes = [1, 32], strides = [1, 1]} : vector<2x128xf32> to vector<1x32xf32>
    %32 = tpu.concatenate %28, %30 in 0 : vector<1x32xf32>, vector<1x32xf32> -> vector<2x32xf32>
    %33 = tpu.concatenate %29, %31 in 0 : vector<1x32xf32>, vector<1x32xf32> -> vector<2x32xf32>
    %34 = vector.extract_strided_slice %27 {offsets = [0, 64], sizes = [1, 32], strides = [1, 1]} : vector<2x128xf32> to vector<1x32xf32>
    %35 = vector.extract_strided_slice %27 {offsets = [1, 64], sizes = [1, 32], strides = [1, 1]} : vector<2x128xf32> to vector<1x32xf32>
    %36 = vector.extract_strided_slice %27 {offsets = [0, 96], sizes = [1, 32], strides = [1, 1]} : vector<2x128xf32> to vector<1x32xf32>
    %37 = vector.extract_strided_slice %27 {offsets = [1, 96], sizes = [1, 32], strides = [1, 1]} : vector<2x128xf32> to vector<1x32xf32>
    %38 = tpu.concatenate %34, %36 in 0 : vector<1x32xf32>, vector<1x32xf32> -> vector<2x32xf32>
    %39 = tpu.concatenate %35, %37 in 0 : vector<1x32xf32>, vector<1x32xf32> -> vector<2x32xf32>
    %c0_25 = arith.constant 0 : index
    %c0_26 = arith.constant 0 : index
    %c0_27 = arith.constant 0 : index
    %40 = vector.load %arg10[%c0_25, %c0_26, %c0_27] : memref<2x64x128xf32, #tpu.memory_space<vmem>>, vector<1x64x128xf32>
    %41 = vector.shape_cast %40 : vector<1x64x128xf32> to vector<64x128xf32>
    %42 = vector.extract_strided_slice %41 {offsets = [0, 0], sizes = [32, 128], strides = [1, 1]} : vector<64x128xf32> to vector<32x128xf32>
    %cst_28 = arith.constant dense<0.000000e+00> : vector<16x128xf32>
    %43 = tpu.matmul %7, %42, %cst_28 {dimension_numbers = #tpu.dot_dimension_numbers<[1], [0], [0], [1], [0, 0, 1, 1], [], []>} : vector<16x32xf32>, vector<32x128xf32>, vector<16x128xf32> -> vector<16x128xf32>
    %c0_29 = arith.constant 0 : index
    %c0_30 = arith.constant 0 : index
    %c0_31 = arith.constant 0 : index
    %44 = vector.load %arg11[%c0_29, %c0_30, %c0_31] : memref<2x1x128xf32, #tpu.memory_space<vmem>>, vector<1x1x128xf32>
    %45 = vector.shape_cast %44 : vector<1x1x128xf32> to vector<1x128xf32>
    %46 = vector.broadcast %45 : vector<1x128xf32> to vector<16x128xf32>
    %47 = arith.addf %43, %46 : vector<16x128xf32>
    %48 = tpu.iota {dimensions = array<i32: 1>} : vector<2x128xi32>
    %c64_i32 = arith.constant 64 : i32
    %49 = vector.broadcast %c64_i32 : i32 to vector<2x128xi32>
    %50 = arith.cmpi sge, %48, %49 : vector<2x128xi32>
    %c96_i32 = arith.constant 96 : i32
    %51 = vector.broadcast %c96_i32 : i32 to vector<2x128xi32>
    %52 = arith.cmpi slt, %48, %51 : vector<2x128xi32>
    %53 = arith.andi %50, %52 : vector<2x128xi1>
    %54 = vector.extract_strided_slice %47 {offsets = [0, 0], sizes = [2, 128], strides = [1, 1]} : vector<16x128xf32> to vector<2x128xf32>
    %55 = vector.extract_strided_slice %41 {offsets = [32, 0], sizes = [32, 128], strides = [1, 1]} : vector<64x128xf32> to vector<32x128xf32>
    %cst_32 = arith.constant dense<0.000000e+00> : vector<2x128xf32>
    %56 = tpu.matmul %32, %55, %cst_32 {dimension_numbers = #tpu.dot_dimension_numbers<[1], [0], [0], [1], [0, 0, 1, 1], [], []>} : vector<2x32xf32>, vector<32x128xf32>, vector<2x128xf32> -> vector<2x128xf32>
    %57 = arith.addf %54, %56 : vector<2x128xf32>
    %58 = math.tanh %57 : vector<2x128xf32>
    %cst_33 = arith.constant 5.000000e-01 : f32
    %59 = vector.broadcast %cst_33 : f32 to vector<2x128xf32>
    %60 = arith.mulf %59, %58 : vector<2x128xf32>
    %cst_34 = arith.constant 5.000000e-01 : f32
    %61 = vector.broadcast %cst_34 : f32 to vector<2x128xf32>
    %62 = arith.addf %60, %61 : vector<2x128xf32>
    %63 = arith.select %53, %58, %62 : vector<2x128xi1>, vector<2x128xf32>
    %64 = vector.extract_strided_slice %63 {offsets = [0, 0], sizes = [2, 32], strides = [1, 1]} : vector<2x128xf32> to vector<2x32xf32>
    %65 = vector.extract_strided_slice %63 {offsets = [0, 32], sizes = [2, 32], strides = [1, 1]} : vector<2x128xf32> to vector<2x32xf32>
    %66 = vector.extract_strided_slice %63 {offsets = [0, 64], sizes = [2, 32], strides = [1, 1]} : vector<2x128xf32> to vector<2x32xf32>
    %67 = vector.extract_strided_slice %63 {offsets = [0, 96], sizes = [2, 32], strides = [1, 1]} : vector<2x128xf32> to vector<2x32xf32>
    %68 = arith.mulf %65, %33 : vector<2x32xf32>
    %69 = arith.mulf %64, %66 : vector<2x32xf32>
    %70 = arith.addf %68, %69 : vector<2x32xf32>
    %71 = math.tanh %70 : vector<2x32xf32>
    %72 = arith.mulf %67, %71 : vector<2x32xf32>
    %73 = tpu.concatenate %72, %38 in 1 : vector<2x32xf32>, vector<2x32xf32> -> vector<2x64xf32>
    %c1 = arith.constant 1 : index
    %c0_35 = arith.constant 0 : index
    %c0_36 = arith.constant 0 : index
    %74 = vector.load %arg10[%c1, %c0_35, %c0_36] : memref<2x64x128xf32, #tpu.memory_space<vmem>>, vector<1x64x128xf32>
    %75 = vector.shape_cast %74 : vector<1x64x128xf32> to vector<64x128xf32>
    %cst_37 = arith.constant dense<0.000000e+00> : vector<2x128xf32>
    %76 = tpu.matmul %73, %75, %cst_37 {dimension_numbers = #tpu.dot_dimension_numbers<[1], [0], [0], [1], [0, 0, 1, 1], [], []>} : vector<2x64xf32>, vector<64x128xf32>, vector<2x128xf32> -> vector<2x128xf32>
    %c1_38 = arith.constant 1 : index
    %c0_39 = arith.constant 0 : index
    %c0_40 = arith.constant 0 : index
    %77 = vector.load %arg11[%c1_38, %c0_39, %c0_40] : memref<2x1x128xf32, #tpu.memory_space<vmem>>, vector<1x1x128xf32>
    %78 = vector.shape_cast %77 : vector<1x1x128xf32> to vector<1x128xf32>
    %79 = vector.broadcast %78 : vector<1x128xf32> to vector<2x128xf32>
    %80 = arith.addf %76, %79 : vector<2x128xf32>
    %81 = math.tanh %80 : vector<2x128xf32>
    %cst_41 = arith.constant 5.000000e-01 : f32
    %82 = vector.broadcast %cst_41 : f32 to vector<2x128xf32>
    %83 = arith.mulf %82, %81 : vector<2x128xf32>
    %cst_42 = arith.constant 5.000000e-01 : f32
    %84 = vector.broadcast %cst_42 : f32 to vector<2x128xf32>
    %85 = arith.addf %83, %84 : vector<2x128xf32>
    %86 = arith.select %53, %81, %85 : vector<2x128xi1>, vector<2x128xf32>
    %87 = vector.extract_strided_slice %86 {offsets = [0, 0], sizes = [2, 32], strides = [1, 1]} : vector<2x128xf32> to vector<2x32xf32>
    %88 = vector.extract_strided_slice %86 {offsets = [0, 32], sizes = [2, 32], strides = [1, 1]} : vector<2x128xf32> to vector<2x32xf32>
    %89 = vector.extract_strided_slice %86 {offsets = [0, 64], sizes = [2, 32], strides = [1, 1]} : vector<2x128xf32> to vector<2x32xf32>
    %90 = vector.extract_strided_slice %86 {offsets = [0, 96], sizes = [2, 32], strides = [1, 1]} : vector<2x128xf32> to vector<2x32xf32>
    %91 = arith.mulf %88, %39 : vector<2x32xf32>
    %92 = arith.mulf %87, %89 : vector<2x32xf32>
    %93 = arith.addf %91, %92 : vector<2x32xf32>
    %94 = math.tanh %93 : vector<2x32xf32>
    %95 = arith.mulf %90, %94 : vector<2x32xf32>
    %c0_43 = arith.constant 0 : index
    %c0_44 = arith.constant 0 : index
    %96 = vector.load %arg16[%c0_43, %c0_44] : memref<16x32xf32, #tpu.memory_space<vmem>>, vector<2x32xf32>
    tpu.vector_store %arg16[%c0_43, %c0_44], %95 {strides = array<i32>} : memref<16x32xf32, #tpu.memory_space<vmem>>, vector<2x32xf32>,
    %97 = vector.extract_strided_slice %47 {offsets = [2, 0], sizes = [2, 128], strides = [1, 1]} : vector<16x128xf32> to vector<2x128xf32>
    %98 = vector.extract_strided_slice %41 {offsets = [32, 0], sizes = [32, 128], strides = [1, 1]} : vector<64x128xf32> to vector<32x128xf32>
    %cst_45 = arith.constant dense<0.000000e+00> : vector<2x128xf32>
    %99 = tpu.matmul %72, %98, %cst_45 {dimension_numbers = #tpu.dot_dimension_numbers<[1], [0], [0], [1], [0, 0, 1, 1], [], []>} : vector<2x32xf32>, vector<32x128xf32>, vector<2x128xf32> -> vector<2x128xf32>
    %100 = arith.addf %97, %99 : vector<2x128xf32>
    %101 = math.tanh %100 : vector<2x128xf32>
    %cst_46 = arith.constant 5.000000e-01 : f32
    %102 = vector.broadcast %cst_46 : f32 to vector<2x128xf32>
    %103 = arith.mulf %102, %101 : vector<2x128xf32>
    %cst_47 = arith.constant 5.000000e-01 : f32
    %104 = vector.broadcast %cst_47 : f32 to vector<2x128xf32>
    %105 = arith.addf %103, %104 : vector<2x128xf32>
    %106 = arith.select %53, %101, %105 : vector<2x128xi1>, vector<2x128xf32>
    %107 = vector.extract_strided_slice %106 {offsets = [0, 0], sizes = [2, 32], strides = [1, 1]} : vector<2x128xf32> to vector<2x32xf32>
    %108 = vector.extract_strided_slice %106 {offsets = [0, 32], sizes = [2, 32], strides = [1, 1]} : vector<2x128xf32> to vector<2x32xf32>
    %109 = vector.extract_strided_slice %106 {offsets = [0, 64], sizes = [2, 32], strides = [1, 1]} : vector<2x128xf32> to vector<2x32xf32>
    %110 = vector.extract_strided_slice %106 {offsets = [0, 96], sizes = [2, 32], strides = [1, 1]} : vector<2x128xf32> to vector<2x32xf32>
    %111 = arith.mulf %108, %70 : vector<2x32xf32>
    %112 = arith.mulf %107, %109 : vector<2x32xf32>
    %113 = arith.addf %111, %112 : vector<2x32xf32>
    %114 = math.tanh %113 : vector<2x32xf32>
    %115 = arith.mulf %110, %114 : vector<2x32xf32>
    %116 = tpu.concatenate %115, %95 in 1 : vector<2x32xf32>, vector<2x32xf32> -> vector<2x64xf32>
    %c1_48 = arith.constant 1 : index
    %c0_49 = arith.constant 0 : index
    %c0_50 = arith.constant 0 : index
    %117 = vector.load %arg10[%c1_48, %c0_49, %c0_50] : memref<2x64x128xf32, #tpu.memory_space<vmem>>, vector<1x64x128xf32>
    %118 = vector.shape_cast %117 : vector<1x64x128xf32> to vector<64x128xf32>
    %cst_51 = arith.constant dense<0.000000e+00> : vector<2x128xf32>
    %119 = tpu.matmul %116, %118, %cst_51 {dimension_numbers = #tpu.dot_dimension_numbers<[1], [0], [0], [1], [0, 0, 1, 1], [], []>} : vector<2x64xf32>, vector<64x128xf32>, vector<2x128xf32> -> vector<2x128xf32>
    %c1_52 = arith.constant 1 : index
    %c0_53 = arith.constant 0 : index
    %c0_54 = arith.constant 0 : index
    %120 = vector.load %arg11[%c1_52, %c0_53, %c0_54] : memref<2x1x128xf32, #tpu.memory_space<vmem>>, vector<1x1x128xf32>
    %121 = vector.shape_cast %120 : vector<1x1x128xf32> to vector<1x128xf32>
    %122 = vector.broadcast %121 : vector<1x128xf32> to vector<2x128xf32>
    %123 = arith.addf %119, %122 : vector<2x128xf32>
    %124 = math.tanh %123 : vector<2x128xf32>
    %cst_55 = arith.constant 5.000000e-01 : f32
    %125 = vector.broadcast %cst_55 : f32 to vector<2x128xf32>
    %126 = arith.mulf %125, %124 : vector<2x128xf32>
    %cst_56 = arith.constant 5.000000e-01 : f32
    %127 = vector.broadcast %cst_56 : f32 to vector<2x128xf32>
    %128 = arith.addf %126, %127 : vector<2x128xf32>
    %129 = arith.select %53, %124, %128 : vector<2x128xi1>, vector<2x128xf32>
    %130 = vector.extract_strided_slice %129 {offsets = [0, 0], sizes = [2, 32], strides = [1, 1]} : vector<2x128xf32> to vector<2x32xf32>
    %131 = vector.extract_strided_slice %129 {offsets = [0, 32], sizes = [2, 32], strides = [1, 1]} : vector<2x128xf32> to vector<2x32xf32>
    %132 = vector.extract_strided_slice %129 {offsets = [0, 64], sizes = [2, 32], strides = [1, 1]} : vector<2x128xf32> to vector<2x32xf32>
    %133 = vector.extract_strided_slice %129 {offsets = [0, 96], sizes = [2, 32], strides = [1, 1]} : vector<2x128xf32> to vector<2x32xf32>
    %134 = arith.mulf %131, %93 : vector<2x32xf32>
    %135 = arith.mulf %130, %132 : vector<2x32xf32>
    %136 = arith.addf %134, %135 : vector<2x32xf32>
    %137 = math.tanh %136 : vector<2x32xf32>
    %138 = arith.mulf %133, %137 : vector<2x32xf32>
    %c2 = arith.constant 2 : index
    %c0_57 = arith.constant 0 : index
    %139 = vector.load %arg16[%c2, %c0_57] : memref<16x32xf32, #tpu.memory_space<vmem>>, vector<2x32xf32>
    tpu.vector_store %arg16[%c2, %c0_57], %138 {strides = array<i32>} : memref<16x32xf32, #tpu.memory_space<vmem>>, vector<2x32xf32>,
    %140 = vector.extract_strided_slice %47 {offsets = [4, 0], sizes = [2, 128], strides = [1, 1]} : vector<16x128xf32> to vector<2x128xf32>
    %141 = vector.extract_strided_slice %41 {offsets = [32, 0], sizes = [32, 128], strides = [1, 1]} : vector<64x128xf32> to vector<32x128xf32>
    %cst_58 = arith.constant dense<0.000000e+00> : vector<2x128xf32>
    %142 = tpu.matmul %115, %141, %cst_58 {dimension_numbers = #tpu.dot_dimension_numbers<[1], [0], [0], [1], [0, 0, 1, 1], [], []>} : vector<2x32xf32>, vector<32x128xf32>, vector<2x128xf32> -> vector<2x128xf32>
    %143 = arith.addf %140, %142 : vector<2x128xf32>
    %144 = math.tanh %143 : vector<2x128xf32>
    %cst_59 = arith.constant 5.000000e-01 : f32
    %145 = vector.broadcast %cst_59 : f32 to vector<2x128xf32>
    %146 = arith.mulf %145, %144 : vector<2x128xf32>
    %cst_60 = arith.constant 5.000000e-01 : f32
    %147 = vector.broadcast %cst_60 : f32 to vector<2x128xf32>
    %148 = arith.addf %146, %147 : vector<2x128xf32>
    %149 = arith.select %53, %144, %148 : vector<2x128xi1>, vector<2x128xf32>
    %150 = vector.extract_strided_slice %149 {offsets = [0, 0], sizes = [2, 32], strides = [1, 1]} : vector<2x128xf32> to vector<2x32xf32>
    %151 = vector.extract_strided_slice %149 {offsets = [0, 32], sizes = [2, 32], strides = [1, 1]} : vector<2x128xf32> to vector<2x32xf32>
    %152 = vector.extract_strided_slice %149 {offsets = [0, 64], sizes = [2, 32], strides = [1, 1]} : vector<2x128xf32> to vector<2x32xf32>
    %153 = vector.extract_strided_slice %149 {offsets = [0, 96], sizes = [2, 32], strides = [1, 1]} : vector<2x128xf32> to vector<2x32xf32>
    %154 = arith.mulf %151, %113 : vector<2x32xf32>
    %155 = arith.mulf %150, %152 : vector<2x32xf32>
    %156 = arith.addf %154, %155 : vector<2x32xf32>
    %157 = math.tanh %156 : vector<2x32xf32>
    %158 = arith.mulf %153, %157 : vector<2x32xf32>
    %159 = tpu.concatenate %158, %138 in 1 : vector<2x32xf32>, vector<2x32xf32> -> vector<2x64xf32>
    %c1_61 = arith.constant 1 : index
    %c0_62 = arith.constant 0 : index
    %c0_63 = arith.constant 0 : index
    %160 = vector.load %arg10[%c1_61, %c0_62, %c0_63] : memref<2x64x128xf32, #tpu.memory_space<vmem>>, vector<1x64x128xf32>
    %161 = vector.shape_cast %160 : vector<1x64x128xf32> to vector<64x128xf32>
    %cst_64 = arith.constant dense<0.000000e+00> : vector<2x128xf32>
    %162 = tpu.matmul %159, %161, %cst_64 {dimension_numbers = #tpu.dot_dimension_numbers<[1], [0], [0], [1], [0, 0, 1, 1], [], []>} : vector<2x64xf32>, vector<64x128xf32>, vector<2x128xf32> -> vector<2x128xf32>
    %c1_65 = arith.constant 1 : index
    %c0_66 = arith.constant 0 : index
    %c0_67 = arith.constant 0 : index
    %163 = vector.load %arg11[%c1_65, %c0_66, %c0_67] : memref<2x1x128xf32, #tpu.memory_space<vmem>>, vector<1x1x128xf32>
    %164 = vector.shape_cast %163 : vector<1x1x128xf32> to vector<1x128xf32>
    %165 = vector.broadcast %164 : vector<1x128xf32> to vector<2x128xf32>
    %166 = arith.addf %162, %165 : vector<2x128xf32>
    %167 = math.tanh %166 : vector<2x128xf32>
    %cst_68 = arith.constant 5.000000e-01 : f32
    %168 = vector.broadcast %cst_68 : f32 to vector<2x128xf32>
    %169 = arith.mulf %168, %167 : vector<2x128xf32>
    %cst_69 = arith.constant 5.000000e-01 : f32
    %170 = vector.broadcast %cst_69 : f32 to vector<2x128xf32>
    %171 = arith.addf %169, %170 : vector<2x128xf32>
    %172 = arith.select %53, %167, %171 : vector<2x128xi1>, vector<2x128xf32>
    %173 = vector.extract_strided_slice %172 {offsets = [0, 0], sizes = [2, 32], strides = [1, 1]} : vector<2x128xf32> to vector<2x32xf32>
    %174 = vector.extract_strided_slice %172 {offsets = [0, 32], sizes = [2, 32], strides = [1, 1]} : vector<2x128xf32> to vector<2x32xf32>
    %175 = vector.extract_strided_slice %172 {offsets = [0, 64], sizes = [2, 32], strides = [1, 1]} : vector<2x128xf32> to vector<2x32xf32>
    %176 = vector.extract_strided_slice %172 {offsets = [0, 96], sizes = [2, 32], strides = [1, 1]} : vector<2x128xf32> to vector<2x32xf32>
    %177 = arith.mulf %174, %136 : vector<2x32xf32>
    %178 = arith.mulf %173, %175 : vector<2x32xf32>
    %179 = arith.addf %177, %178 : vector<2x32xf32>
    %180 = math.tanh %179 : vector<2x32xf32>
    %181 = arith.mulf %176, %180 : vector<2x32xf32>
    %c4 = arith.constant 4 : index
    %c0_70 = arith.constant 0 : index
    %182 = vector.load %arg16[%c4, %c0_70] : memref<16x32xf32, #tpu.memory_space<vmem>>, vector<2x32xf32>
    tpu.vector_store %arg16[%c4, %c0_70], %181 {strides = array<i32>} : memref<16x32xf32, #tpu.memory_space<vmem>>, vector<2x32xf32>,
    %183 = vector.extract_strided_slice %47 {offsets = [6, 0], sizes = [2, 128], strides = [1, 1]} : vector<16x128xf32> to vector<2x128xf32>
    %184 = vector.extract_strided_slice %41 {offsets = [32, 0], sizes = [32, 128], strides = [1, 1]} : vector<64x128xf32> to vector<32x128xf32>
    %cst_71 = arith.constant dense<0.000000e+00> : vector<2x128xf32>
    %185 = tpu.matmul %158, %184, %cst_71 {dimension_numbers = #tpu.dot_dimension_numbers<[1], [0], [0], [1], [0, 0, 1, 1], [], []>} : vector<2x32xf32>, vector<32x128xf32>, vector<2x128xf32> -> vector<2x128xf32>
    %186 = arith.addf %183, %185 : vector<2x128xf32>
    %187 = math.tanh %186 : vector<2x128xf32>
    %cst_72 = arith.constant 5.000000e-01 : f32
    %188 = vector.broadcast %cst_72 : f32 to vector<2x128xf32>
    %189 = arith.mulf %188, %187 : vector<2x128xf32>
    %cst_73 = arith.constant 5.000000e-01 : f32
    %190 = vector.broadcast %cst_73 : f32 to vector<2x128xf32>
    %191 = arith.addf %189, %190 : vector<2x128xf32>
    %192 = arith.select %53, %187, %191 : vector<2x128xi1>, vector<2x128xf32>
    %193 = vector.extract_strided_slice %192 {offsets = [0, 0], sizes = [2, 32], strides = [1, 1]} : vector<2x128xf32> to vector<2x32xf32>
    %194 = vector.extract_strided_slice %192 {offsets = [0, 32], sizes = [2, 32], strides = [1, 1]} : vector<2x128xf32> to vector<2x32xf32>
    %195 = vector.extract_strided_slice %192 {offsets = [0, 64], sizes = [2, 32], strides = [1, 1]} : vector<2x128xf32> to vector<2x32xf32>
    %196 = vector.extract_strided_slice %192 {offsets = [0, 96], sizes = [2, 32], strides = [1, 1]} : vector<2x128xf32> to vector<2x32xf32>
    %197 = arith.mulf %194, %156 : vector<2x32xf32>
    %198 = arith.mulf %193, %195 : vector<2x32xf32>
    %199 = arith.addf %197, %198 : vector<2x32xf32>
    %200 = math.tanh %199 : vector<2x32xf32>
    %201 = arith.mulf %196, %200 : vector<2x32xf32>
    %202 = tpu.concatenate %201, %181 in 1 : vector<2x32xf32>, vector<2x32xf32> -> vector<2x64xf32>
    %c1_74 = arith.constant 1 : index
    %c0_75 = arith.constant 0 : index
    %c0_76 = arith.constant 0 : index
    %203 = vector.load %arg10[%c1_74, %c0_75, %c0_76] : memref<2x64x128xf32, #tpu.memory_space<vmem>>, vector<1x64x128xf32>
    %204 = vector.shape_cast %203 : vector<1x64x128xf32> to vector<64x128xf32>
    %cst_77 = arith.constant dense<0.000000e+00> : vector<2x128xf32>
    %205 = tpu.matmul %202, %204, %cst_77 {dimension_numbers = #tpu.dot_dimension_numbers<[1], [0], [0], [1], [0, 0, 1, 1], [], []>} : vector<2x64xf32>, vector<64x128xf32>, vector<2x128xf32> -> vector<2x128xf32>
    %c1_78 = arith.constant 1 : index
    %c0_79 = arith.constant 0 : index
    %c0_80 = arith.constant 0 : index
    %206 = vector.load %arg11[%c1_78, %c0_79, %c0_80] : memref<2x1x128xf32, #tpu.memory_space<vmem>>, vector<1x1x128xf32>
    %207 = vector.shape_cast %206 : vector<1x1x128xf32> to vector<1x128xf32>
    %208 = vector.broadcast %207 : vector<1x128xf32> to vector<2x128xf32>
    %209 = arith.addf %205, %208 : vector<2x128xf32>
    %210 = math.tanh %209 : vector<2x128xf32>
    %cst_81 = arith.constant 5.000000e-01 : f32
    %211 = vector.broadcast %cst_81 : f32 to vector<2x128xf32>
    %212 = arith.mulf %211, %210 : vector<2x128xf32>
    %cst_82 = arith.constant 5.000000e-01 : f32
    %213 = vector.broadcast %cst_82 : f32 to vector<2x128xf32>
    %214 = arith.addf %212, %213 : vector<2x128xf32>
    %215 = arith.select %53, %210, %214 : vector<2x128xi1>, vector<2x128xf32>
    %216 = vector.extract_strided_slice %215 {offsets = [0, 0], sizes = [2, 32], strides = [1, 1]} : vector<2x128xf32> to vector<2x32xf32>
    %217 = vector.extract_strided_slice %215 {offsets = [0, 32], sizes = [2, 32], strides = [1, 1]} : vector<2x128xf32> to vector<2x32xf32>
    %218 = vector.extract_strided_slice %215 {offsets = [0, 64], sizes = [2, 32], strides = [1, 1]} : vector<2x128xf32> to vector<2x32xf32>
    %219 = vector.extract_strided_slice %215 {offsets = [0, 96], sizes = [2, 32], strides = [1, 1]} : vector<2x128xf32> to vector<2x32xf32>
    %220 = arith.mulf %217, %179 : vector<2x32xf32>
    %221 = arith.mulf %216, %218 : vector<2x32xf32>
    %222 = arith.addf %220, %221 : vector<2x32xf32>
    %223 = math.tanh %222 : vector<2x32xf32>
    %224 = arith.mulf %219, %223 : vector<2x32xf32>
    %c6 = arith.constant 6 : index
    %c0_83 = arith.constant 0 : index
    %225 = vector.load %arg16[%c6, %c0_83] : memref<16x32xf32, #tpu.memory_space<vmem>>, vector<2x32xf32>
    tpu.vector_store %arg16[%c6, %c0_83], %224 {strides = array<i32>} : memref<16x32xf32, #tpu.memory_space<vmem>>, vector<2x32xf32>,
    %226 = vector.extract_strided_slice %47 {offsets = [8, 0], sizes = [2, 128], strides = [1, 1]} : vector<16x128xf32> to vector<2x128xf32>
    %227 = vector.extract_strided_slice %41 {offsets = [32, 0], sizes = [32, 128], strides = [1, 1]} : vector<64x128xf32> to vector<32x128xf32>
    %cst_84 = arith.constant dense<0.000000e+00> : vector<2x128xf32>
    %228 = tpu.matmul %201, %227, %cst_84 {dimension_numbers = #tpu.dot_dimension_numbers<[1], [0], [0], [1], [0, 0, 1, 1], [], []>} : vector<2x32xf32>, vector<32x128xf32>, vector<2x128xf32> -> vector<2x128xf32>
    %229 = arith.addf %226, %228 : vector<2x128xf32>
    %230 = math.tanh %229 : vector<2x128xf32>
    %cst_85 = arith.constant 5.000000e-01 : f32
    %231 = vector.broadcast %cst_85 : f32 to vector<2x128xf32>
    %232 = arith.mulf %231, %230 : vector<2x128xf32>
    %cst_86 = arith.constant 5.000000e-01 : f32
    %233 = vector.broadcast %cst_86 : f32 to vector<2x128xf32>
    %234 = arith.addf %232, %233 : vector<2x128xf32>
    %235 = arith.select %53, %230, %234 : vector<2x128xi1>, vector<2x128xf32>
    %236 = vector.extract_strided_slice %235 {offsets = [0, 0], sizes = [2, 32], strides = [1, 1]} : vector<2x128xf32> to vector<2x32xf32>
    %237 = vector.extract_strided_slice %235 {offsets = [0, 32], sizes = [2, 32], strides = [1, 1]} : vector<2x128xf32> to vector<2x32xf32>
    %238 = vector.extract_strided_slice %235 {offsets = [0, 64], sizes = [2, 32], strides = [1, 1]} : vector<2x128xf32> to vector<2x32xf32>
    %239 = vector.extract_strided_slice %235 {offsets = [0, 96], sizes = [2, 32], strides = [1, 1]} : vector<2x128xf32> to vector<2x32xf32>
    %240 = arith.mulf %237, %199 : vector<2x32xf32>
    %241 = arith.mulf %236, %238 : vector<2x32xf32>
    %242 = arith.addf %240, %241 : vector<2x32xf32>
    %243 = math.tanh %242 : vector<2x32xf32>
    %244 = arith.mulf %239, %243 : vector<2x32xf32>
    %245 = tpu.concatenate %244, %224 in 1 : vector<2x32xf32>, vector<2x32xf32> -> vector<2x64xf32>
    %c1_87 = arith.constant 1 : index
    %c0_88 = arith.constant 0 : index
    %c0_89 = arith.constant 0 : index
    %246 = vector.load %arg10[%c1_87, %c0_88, %c0_89] : memref<2x64x128xf32, #tpu.memory_space<vmem>>, vector<1x64x128xf32>
    %247 = vector.shape_cast %246 : vector<1x64x128xf32> to vector<64x128xf32>
    %cst_90 = arith.constant dense<0.000000e+00> : vector<2x128xf32>
    %248 = tpu.matmul %245, %247, %cst_90 {dimension_numbers = #tpu.dot_dimension_numbers<[1], [0], [0], [1], [0, 0, 1, 1], [], []>} : vector<2x64xf32>, vector<64x128xf32>, vector<2x128xf32> -> vector<2x128xf32>
    %c1_91 = arith.constant 1 : index
    %c0_92 = arith.constant 0 : index
    %c0_93 = arith.constant 0 : index
    %249 = vector.load %arg11[%c1_91, %c0_92, %c0_93] : memref<2x1x128xf32, #tpu.memory_space<vmem>>, vector<1x1x128xf32>
    %250 = vector.shape_cast %249 : vector<1x1x128xf32> to vector<1x128xf32>
    %251 = vector.broadcast %250 : vector<1x128xf32> to vector<2x128xf32>
    %252 = arith.addf %248, %251 : vector<2x128xf32>
    %253 = math.tanh %252 : vector<2x128xf32>
    %cst_94 = arith.constant 5.000000e-01 : f32
    %254 = vector.broadcast %cst_94 : f32 to vector<2x128xf32>
    %255 = arith.mulf %254, %253 : vector<2x128xf32>
    %cst_95 = arith.constant 5.000000e-01 : f32
    %256 = vector.broadcast %cst_95 : f32 to vector<2x128xf32>
    %257 = arith.addf %255, %256 : vector<2x128xf32>
    %258 = arith.select %53, %253, %257 : vector<2x128xi1>, vector<2x128xf32>
    %259 = vector.extract_strided_slice %258 {offsets = [0, 0], sizes = [2, 32], strides = [1, 1]} : vector<2x128xf32> to vector<2x32xf32>
    %260 = vector.extract_strided_slice %258 {offsets = [0, 32], sizes = [2, 32], strides = [1, 1]} : vector<2x128xf32> to vector<2x32xf32>
    %261 = vector.extract_strided_slice %258 {offsets = [0, 64], sizes = [2, 32], strides = [1, 1]} : vector<2x128xf32> to vector<2x32xf32>
    %262 = vector.extract_strided_slice %258 {offsets = [0, 96], sizes = [2, 32], strides = [1, 1]} : vector<2x128xf32> to vector<2x32xf32>
    %263 = arith.mulf %260, %222 : vector<2x32xf32>
    %264 = arith.mulf %259, %261 : vector<2x32xf32>
    %265 = arith.addf %263, %264 : vector<2x32xf32>
    %266 = math.tanh %265 : vector<2x32xf32>
    %267 = arith.mulf %262, %266 : vector<2x32xf32>
    %c8 = arith.constant 8 : index
    %c0_96 = arith.constant 0 : index
    %268 = vector.load %arg16[%c8, %c0_96] : memref<16x32xf32, #tpu.memory_space<vmem>>, vector<2x32xf32>
    tpu.vector_store %arg16[%c8, %c0_96], %267 {strides = array<i32>} : memref<16x32xf32, #tpu.memory_space<vmem>>, vector<2x32xf32>,
    %269 = vector.extract_strided_slice %47 {offsets = [10, 0], sizes = [2, 128], strides = [1, 1]} : vector<16x128xf32> to vector<2x128xf32>
    %270 = vector.extract_strided_slice %41 {offsets = [32, 0], sizes = [32, 128], strides = [1, 1]} : vector<64x128xf32> to vector<32x128xf32>
    %cst_97 = arith.constant dense<0.000000e+00> : vector<2x128xf32>
    %271 = tpu.matmul %244, %270, %cst_97 {dimension_numbers = #tpu.dot_dimension_numbers<[1], [0], [0], [1], [0, 0, 1, 1], [], []>} : vector<2x32xf32>, vector<32x128xf32>, vector<2x128xf32> -> vector<2x128xf32>
    %272 = arith.addf %269, %271 : vector<2x128xf32>
    %273 = math.tanh %272 : vector<2x128xf32>
    %cst_98 = arith.constant 5.000000e-01 : f32
    %274 = vector.broadcast %cst_98 : f32 to vector<2x128xf32>
    %275 = arith.mulf %274, %273 : vector<2x128xf32>
    %cst_99 = arith.constant 5.000000e-01 : f32
    %276 = vector.broadcast %cst_99 : f32 to vector<2x128xf32>
    %277 = arith.addf %275, %276 : vector<2x128xf32>
    %278 = arith.select %53, %273, %277 : vector<2x128xi1>, vector<2x128xf32>
    %279 = vector.extract_strided_slice %278 {offsets = [0, 0], sizes = [2, 32], strides = [1, 1]} : vector<2x128xf32> to vector<2x32xf32>
    %280 = vector.extract_strided_slice %278 {offsets = [0, 32], sizes = [2, 32], strides = [1, 1]} : vector<2x128xf32> to vector<2x32xf32>
    %281 = vector.extract_strided_slice %278 {offsets = [0, 64], sizes = [2, 32], strides = [1, 1]} : vector<2x128xf32> to vector<2x32xf32>
    %282 = vector.extract_strided_slice %278 {offsets = [0, 96], sizes = [2, 32], strides = [1, 1]} : vector<2x128xf32> to vector<2x32xf32>
    %283 = arith.mulf %280, %242 : vector<2x32xf32>
    %284 = arith.mulf %279, %281 : vector<2x32xf32>
    %285 = arith.addf %283, %284 : vector<2x32xf32>
    %286 = math.tanh %285 : vector<2x32xf32>
    %287 = arith.mulf %282, %286 : vector<2x32xf32>
    %288 = tpu.concatenate %287, %267 in 1 : vector<2x32xf32>, vector<2x32xf32> -> vector<2x64xf32>
    %c1_100 = arith.constant 1 : index
    %c0_101 = arith.constant 0 : index
    %c0_102 = arith.constant 0 : index
    %289 = vector.load %arg10[%c1_100, %c0_101, %c0_102] : memref<2x64x128xf32, #tpu.memory_space<vmem>>, vector<1x64x128xf32>
    %290 = vector.shape_cast %289 : vector<1x64x128xf32> to vector<64x128xf32>
    %cst_103 = arith.constant dense<0.000000e+00> : vector<2x128xf32>
    %291 = tpu.matmul %288, %290, %cst_103 {dimension_numbers = #tpu.dot_dimension_numbers<[1], [0], [0], [1], [0, 0, 1, 1], [], []>} : vector<2x64xf32>, vector<64x128xf32>, vector<2x128xf32> -> vector<2x128xf32>
    %c1_104 = arith.constant 1 : index
    %c0_105 = arith.constant 0 : index
    %c0_106 = arith.constant 0 : index
    %292 = vector.load %arg11[%c1_104, %c0_105, %c0_106] : memref<2x1x128xf32, #tpu.memory_space<vmem>>, vector<1x1x128xf32>
    %293 = vector.shape_cast %292 : vector<1x1x128xf32> to vector<1x128xf32>
    %294 = vector.broadcast %293 : vector<1x128xf32> to vector<2x128xf32>
    %295 = arith.addf %291, %294 : vector<2x128xf32>
    %296 = math.tanh %295 : vector<2x128xf32>
    %cst_107 = arith.constant 5.000000e-01 : f32
    %297 = vector.broadcast %cst_107 : f32 to vector<2x128xf32>
    %298 = arith.mulf %297, %296 : vector<2x128xf32>
    %cst_108 = arith.constant 5.000000e-01 : f32
    %299 = vector.broadcast %cst_108 : f32 to vector<2x128xf32>
    %300 = arith.addf %298, %299 : vector<2x128xf32>
    %301 = arith.select %53, %296, %300 : vector<2x128xi1>, vector<2x128xf32>
    %302 = vector.extract_strided_slice %301 {offsets = [0, 0], sizes = [2, 32], strides = [1, 1]} : vector<2x128xf32> to vector<2x32xf32>
    %303 = vector.extract_strided_slice %301 {offsets = [0, 32], sizes = [2, 32], strides = [1, 1]} : vector<2x128xf32> to vector<2x32xf32>
    %304 = vector.extract_strided_slice %301 {offsets = [0, 64], sizes = [2, 32], strides = [1, 1]} : vector<2x128xf32> to vector<2x32xf32>
    %305 = vector.extract_strided_slice %301 {offsets = [0, 96], sizes = [2, 32], strides = [1, 1]} : vector<2x128xf32> to vector<2x32xf32>
    %306 = arith.mulf %303, %265 : vector<2x32xf32>
    %307 = arith.mulf %302, %304 : vector<2x32xf32>
    %308 = arith.addf %306, %307 : vector<2x32xf32>
    %309 = math.tanh %308 : vector<2x32xf32>
    %310 = arith.mulf %305, %309 : vector<2x32xf32>
    %c10 = arith.constant 10 : index
    %c0_109 = arith.constant 0 : index
    %311 = vector.load %arg16[%c10, %c0_109] : memref<16x32xf32, #tpu.memory_space<vmem>>, vector<2x32xf32>
    tpu.vector_store %arg16[%c10, %c0_109], %310 {strides = array<i32>} : memref<16x32xf32, #tpu.memory_space<vmem>>, vector<2x32xf32>,
    %312 = vector.extract_strided_slice %47 {offsets = [12, 0], sizes = [2, 128], strides = [1, 1]} : vector<16x128xf32> to vector<2x128xf32>
    %313 = vector.extract_strided_slice %41 {offsets = [32, 0], sizes = [32, 128], strides = [1, 1]} : vector<64x128xf32> to vector<32x128xf32>
    %cst_110 = arith.constant dense<0.000000e+00> : vector<2x128xf32>
    %314 = tpu.matmul %287, %313, %cst_110 {dimension_numbers = #tpu.dot_dimension_numbers<[1], [0], [0], [1], [0, 0, 1, 1], [], []>} : vector<2x32xf32>, vector<32x128xf32>, vector<2x128xf32> -> vector<2x128xf32>
    %315 = arith.addf %312, %314 : vector<2x128xf32>
    %316 = math.tanh %315 : vector<2x128xf32>
    %cst_111 = arith.constant 5.000000e-01 : f32
    %317 = vector.broadcast %cst_111 : f32 to vector<2x128xf32>
    %318 = arith.mulf %317, %316 : vector<2x128xf32>
    %cst_112 = arith.constant 5.000000e-01 : f32
    %319 = vector.broadcast %cst_112 : f32 to vector<2x128xf32>
    %320 = arith.addf %318, %319 : vector<2x128xf32>
    %321 = arith.select %53, %316, %320 : vector<2x128xi1>, vector<2x128xf32>
    %322 = vector.extract_strided_slice %321 {offsets = [0, 0], sizes = [2, 32], strides = [1, 1]} : vector<2x128xf32> to vector<2x32xf32>
    %323 = vector.extract_strided_slice %321 {offsets = [0, 32], sizes = [2, 32], strides = [1, 1]} : vector<2x128xf32> to vector<2x32xf32>
    %324 = vector.extract_strided_slice %321 {offsets = [0, 64], sizes = [2, 32], strides = [1, 1]} : vector<2x128xf32> to vector<2x32xf32>
    %325 = vector.extract_strided_slice %321 {offsets = [0, 96], sizes = [2, 32], strides = [1, 1]} : vector<2x128xf32> to vector<2x32xf32>
    %326 = arith.mulf %323, %285 : vector<2x32xf32>
    %327 = arith.mulf %322, %324 : vector<2x32xf32>
    %328 = arith.addf %326, %327 : vector<2x32xf32>
    %329 = math.tanh %328 : vector<2x32xf32>
    %330 = arith.mulf %325, %329 : vector<2x32xf32>
    %331 = tpu.concatenate %330, %310 in 1 : vector<2x32xf32>, vector<2x32xf32> -> vector<2x64xf32>
    %c1_113 = arith.constant 1 : index
    %c0_114 = arith.constant 0 : index
    %c0_115 = arith.constant 0 : index
    %332 = vector.load %arg10[%c1_113, %c0_114, %c0_115] : memref<2x64x128xf32, #tpu.memory_space<vmem>>, vector<1x64x128xf32>
    %333 = vector.shape_cast %332 : vector<1x64x128xf32> to vector<64x128xf32>
    %cst_116 = arith.constant dense<0.000000e+00> : vector<2x128xf32>
    %334 = tpu.matmul %331, %333, %cst_116 {dimension_numbers = #tpu.dot_dimension_numbers<[1], [0], [0], [1], [0, 0, 1, 1], [], []>} : vector<2x64xf32>, vector<64x128xf32>, vector<2x128xf32> -> vector<2x128xf32>
    %c1_117 = arith.constant 1 : index
    %c0_118 = arith.constant 0 : index
    %c0_119 = arith.constant 0 : index
    %335 = vector.load %arg11[%c1_117, %c0_118, %c0_119] : memref<2x1x128xf32, #tpu.memory_space<vmem>>, vector<1x1x128xf32>
    %336 = vector.shape_cast %335 : vector<1x1x128xf32> to vector<1x128xf32>
    %337 = vector.broadcast %336 : vector<1x128xf32> to vector<2x128xf32>
    %338 = arith.addf %334, %337 : vector<2x128xf32>
    %339 = math.tanh %338 : vector<2x128xf32>
    %cst_120 = arith.constant 5.000000e-01 : f32
    %340 = vector.broadcast %cst_120 : f32 to vector<2x128xf32>
    %341 = arith.mulf %340, %339 : vector<2x128xf32>
    %cst_121 = arith.constant 5.000000e-01 : f32
    %342 = vector.broadcast %cst_121 : f32 to vector<2x128xf32>
    %343 = arith.addf %341, %342 : vector<2x128xf32>
    %344 = arith.select %53, %339, %343 : vector<2x128xi1>, vector<2x128xf32>
    %345 = vector.extract_strided_slice %344 {offsets = [0, 0], sizes = [2, 32], strides = [1, 1]} : vector<2x128xf32> to vector<2x32xf32>
    %346 = vector.extract_strided_slice %344 {offsets = [0, 32], sizes = [2, 32], strides = [1, 1]} : vector<2x128xf32> to vector<2x32xf32>
    %347 = vector.extract_strided_slice %344 {offsets = [0, 64], sizes = [2, 32], strides = [1, 1]} : vector<2x128xf32> to vector<2x32xf32>
    %348 = vector.extract_strided_slice %344 {offsets = [0, 96], sizes = [2, 32], strides = [1, 1]} : vector<2x128xf32> to vector<2x32xf32>
    %349 = arith.mulf %346, %308 : vector<2x32xf32>
    %350 = arith.mulf %345, %347 : vector<2x32xf32>
    %351 = arith.addf %349, %350 : vector<2x32xf32>
    %352 = math.tanh %351 : vector<2x32xf32>
    %353 = arith.mulf %348, %352 : vector<2x32xf32>
    %c12 = arith.constant 12 : index
    %c0_122 = arith.constant 0 : index
    %354 = vector.load %arg16[%c12, %c0_122] : memref<16x32xf32, #tpu.memory_space<vmem>>, vector<2x32xf32>
    tpu.vector_store %arg16[%c12, %c0_122], %353 {strides = array<i32>} : memref<16x32xf32, #tpu.memory_space<vmem>>, vector<2x32xf32>,
    %355 = vector.extract_strided_slice %47 {offsets = [14, 0], sizes = [2, 128], strides = [1, 1]} : vector<16x128xf32> to vector<2x128xf32>
    %356 = vector.extract_strided_slice %41 {offsets = [32, 0], sizes = [32, 128], strides = [1, 1]} : vector<64x128xf32> to vector<32x128xf32>
    %cst_123 = arith.constant dense<0.000000e+00> : vector<2x128xf32>
    %357 = tpu.matmul %330, %356, %cst_123 {dimension_numbers = #tpu.dot_dimension_numbers<[1], [0], [0], [1], [0, 0, 1, 1], [], []>} : vector<2x32xf32>, vector<32x128xf32>, vector<2x128xf32> -> vector<2x128xf32>
    %358 = arith.addf %355, %357 : vector<2x128xf32>
    %359 = math.tanh %358 : vector<2x128xf32>
    %cst_124 = arith.constant 5.000000e-01 : f32
    %360 = vector.broadcast %cst_124 : f32 to vector<2x128xf32>
    %361 = arith.mulf %360, %359 : vector<2x128xf32>
    %cst_125 = arith.constant 5.000000e-01 : f32
    %362 = vector.broadcast %cst_125 : f32 to vector<2x128xf32>
    %363 = arith.addf %361, %362 : vector<2x128xf32>
    %364 = arith.select %53, %359, %363 : vector<2x128xi1>, vector<2x128xf32>
    %365 = vector.extract_strided_slice %364 {offsets = [0, 0], sizes = [2, 32], strides = [1, 1]} : vector<2x128xf32> to vector<2x32xf32>
    %366 = vector.extract_strided_slice %364 {offsets = [0, 32], sizes = [2, 32], strides = [1, 1]} : vector<2x128xf32> to vector<2x32xf32>
    %367 = vector.extract_strided_slice %364 {offsets = [0, 64], sizes = [2, 32], strides = [1, 1]} : vector<2x128xf32> to vector<2x32xf32>
    %368 = vector.extract_strided_slice %364 {offsets = [0, 96], sizes = [2, 32], strides = [1, 1]} : vector<2x128xf32> to vector<2x32xf32>
    %369 = arith.mulf %366, %328 : vector<2x32xf32>
    %370 = arith.mulf %365, %367 : vector<2x32xf32>
    %371 = arith.addf %369, %370 : vector<2x32xf32>
    %372 = math.tanh %371 : vector<2x32xf32>
    %373 = arith.mulf %368, %372 : vector<2x32xf32>
    %374 = tpu.concatenate %373, %353 in 1 : vector<2x32xf32>, vector<2x32xf32> -> vector<2x64xf32>
    %c1_126 = arith.constant 1 : index
    %c0_127 = arith.constant 0 : index
    %c0_128 = arith.constant 0 : index
    %375 = vector.load %arg10[%c1_126, %c0_127, %c0_128] : memref<2x64x128xf32, #tpu.memory_space<vmem>>, vector<1x64x128xf32>
    %376 = vector.shape_cast %375 : vector<1x64x128xf32> to vector<64x128xf32>
    %cst_129 = arith.constant dense<0.000000e+00> : vector<2x128xf32>
    %377 = tpu.matmul %374, %376, %cst_129 {dimension_numbers = #tpu.dot_dimension_numbers<[1], [0], [0], [1], [0, 0, 1, 1], [], []>} : vector<2x64xf32>, vector<64x128xf32>, vector<2x128xf32> -> vector<2x128xf32>
    %c1_130 = arith.constant 1 : index
    %c0_131 = arith.constant 0 : index
    %c0_132 = arith.constant 0 : index
    %378 = vector.load %arg11[%c1_130, %c0_131, %c0_132] : memref<2x1x128xf32, #tpu.memory_space<vmem>>, vector<1x1x128xf32>
    %379 = vector.shape_cast %378 : vector<1x1x128xf32> to vector<1x128xf32>
    %380 = vector.broadcast %379 : vector<1x128xf32> to vector<2x128xf32>
    %381 = arith.addf %377, %380 : vector<2x128xf32>
    %382 = math.tanh %381 : vector<2x128xf32>
    %cst_133 = arith.constant 5.000000e-01 : f32
    %383 = vector.broadcast %cst_133 : f32 to vector<2x128xf32>
    %384 = arith.mulf %383, %382 : vector<2x128xf32>
    %cst_134 = arith.constant 5.000000e-01 : f32
    %385 = vector.broadcast %cst_134 : f32 to vector<2x128xf32>
    %386 = arith.addf %384, %385 : vector<2x128xf32>
    %387 = arith.select %53, %382, %386 : vector<2x128xi1>, vector<2x128xf32>
    %388 = vector.extract_strided_slice %387 {offsets = [0, 0], sizes = [2, 32], strides = [1, 1]} : vector<2x128xf32> to vector<2x32xf32>
    %389 = vector.extract_strided_slice %387 {offsets = [0, 32], sizes = [2, 32], strides = [1, 1]} : vector<2x128xf32> to vector<2x32xf32>
    %390 = vector.extract_strided_slice %387 {offsets = [0, 64], sizes = [2, 32], strides = [1, 1]} : vector<2x128xf32> to vector<2x32xf32>
    %391 = vector.extract_strided_slice %387 {offsets = [0, 96], sizes = [2, 32], strides = [1, 1]} : vector<2x128xf32> to vector<2x32xf32>
    %392 = arith.mulf %389, %351 : vector<2x32xf32>
    %393 = arith.mulf %388, %390 : vector<2x32xf32>
    %394 = arith.addf %392, %393 : vector<2x32xf32>
    %395 = math.tanh %394 : vector<2x32xf32>
    %396 = arith.mulf %391, %395 : vector<2x32xf32>
    %c14 = arith.constant 14 : index
    %c0_135 = arith.constant 0 : index
    %397 = vector.load %arg16[%c14, %c0_135] : memref<16x32xf32, #tpu.memory_space<vmem>>, vector<2x32xf32>
    tpu.vector_store %arg16[%c14, %c0_135], %396 {strides = array<i32>} : memref<16x32xf32, #tpu.memory_space<vmem>>, vector<2x32xf32>,
    %c0_136 = arith.constant 0 : index
    %c0_137 = arith.constant 0 : index
    %398 = vector.load %arg16[%c0_136, %c0_137] : memref<16x32xf32, #tpu.memory_space<vmem>>, vector<16x32xf32>
    %c0_138 = arith.constant 0 : index
    %c0_139 = arith.constant 0 : index
    %399 = vector.load %arg12[%c0_138, %c0_139] : memref<32x128xf32, #tpu.memory_space<vmem>>, vector<32x128xf32>
    %cst_140 = arith.constant dense<0.000000e+00> : vector<16x128xf32>
    %400 = tpu.matmul %398, %399, %cst_140 {dimension_numbers = #tpu.dot_dimension_numbers<[1], [0], [0], [1], [0, 0, 1, 1], [], []>} : vector<16x32xf32>, vector<32x128xf32>, vector<16x128xf32> -> vector<16x128xf32>
    %c0_141 = arith.constant 0 : index
    %c0_142 = arith.constant 0 : index
    %401 = vector.load %arg13[%c0_141, %c0_142] : memref<1x128xf32, #tpu.memory_space<vmem>>, vector<1x128xf32>
    %402 = vector.broadcast %401 : vector<1x128xf32> to vector<16x128xf32>
    %403 = arith.addf %400, %402 : vector<16x128xf32>
    %c0_143 = arith.constant 0 : index
    %c0_144 = arith.constant 0 : index
    %404 = vector.load %arg14[%c0_143, %c0_144] : memref<16x128xf32, #tpu.memory_space<vmem>>, vector<16x128xf32>
    tpu.vector_store %arg14[%c0_143, %c0_144], %403 {strides = array<i32>} : memref<16x128xf32, #tpu.memory_space<vmem>>, vector<16x128xf32>,
    %c0_145 = arith.constant 0 : index
    %c0_146 = arith.constant 0 : index
    %c0_147 = arith.constant 0 : index
    %405 = vector.load %arg15[%c0_145, %c0_146, %c0_147] : memref<4x2x32xf32, #tpu.memory_space<vmem>>, vector<1x2x32xf32>
    %406 = vector.shape_cast %405 : vector<1x2x32xf32> to vector<2x32xf32>
    %407 = vector.shape_cast %373 : vector<2x32xf32> to vector<1x2x32xf32>
    tpu.vector_store %arg15[%c0_145, %c0_146, %c0_147], %407 {strides = array<i32>} : memref<4x2x32xf32, #tpu.memory_space<vmem>>, vector<1x2x32xf32>,
    %c2_148 = arith.constant 2 : index
    %c0_149 = arith.constant 0 : index
    %c0_150 = arith.constant 0 : index
    %408 = vector.load %arg15[%c2_148, %c0_149, %c0_150] : memref<4x2x32xf32, #tpu.memory_space<vmem>>, vector<1x2x32xf32>
    %409 = vector.shape_cast %408 : vector<1x2x32xf32> to vector<2x32xf32>
    %410 = vector.shape_cast %371 : vector<2x32xf32> to vector<1x2x32xf32>
    tpu.vector_store %arg15[%c2_148, %c0_149, %c0_150], %410 {strides = array<i32>} : memref<4x2x32xf32, #tpu.memory_space<vmem>>, vector<1x2x32xf32>,
    %c1_151 = arith.constant 1 : index
    %c0_152 = arith.constant 0 : index
    %c0_153 = arith.constant 0 : index
    %411 = vector.load %arg15[%c1_151, %c0_152, %c0_153] : memref<4x2x32xf32, #tpu.memory_space<vmem>>, vector<1x2x32xf32>
    %412 = vector.shape_cast %411 : vector<1x2x32xf32> to vector<2x32xf32>
    %413 = vector.shape_cast %396 : vector<2x32xf32> to vector<1x2x32xf32>
    tpu.vector_store %arg15[%c1_151, %c0_152, %c0_153], %413 {strides = array<i32>} : memref<4x2x32xf32, #tpu.memory_space<vmem>>, vector<1x2x32xf32>,
    %c3 = arith.constant 3 : index
    %c0_154 = arith.constant 0 : index
    %c0_155 = arith.constant 0 : index
    %414 = vector.load %arg15[%c3, %c0_154, %c0_155] : memref<4x2x32xf32, #tpu.memory_space<vmem>>, vector<1x2x32xf32>
    %415 = vector.shape_cast %414 : vector<1x2x32xf32> to vector<2x32xf32>
    %416 = vector.shape_cast %394 : vector<2x32xf32> to vector<1x2x32xf32>
    tpu.vector_store %arg15[%c3, %c0_154, %c0_155], %416 {strides = array<i32>} : memref<4x2x32xf32, #tpu.memory_space<vmem>>, vector<1x2x32xf32>,
    return
  }
}

</mosaic_0001>

<bundles_post_ra>
// kernel: tpu_custom_call.1
= control target key start
LH: loop header
LB: loop body
LE: loop exit
PB: predicated region body
PF: predicated region fallthrough
CT: control target
= control target key end

     0   :  { %21 = vsyncpa [#allocation4], 0  ;;  %s4189_s0 = inlined_call_operand.hbm [shape: f32[16,12], index: 0, kind: input, shape index: {}]   ;;  %s4190_s1 = inlined_call_operand.vmem [shape: f32[2,16], index: 1, kind: input, shape index: {}]   ;;  %s4191_s2 = inlined_call_operand.hbm [shape: f32[12,32], index: 2, kind: input, shape index: {}]   ;;  %s4192_s3 = inlined_call_operand.vmem [shape: f32[1,32], index: 3, kind: input, shape index: {}]   ;;  %s4193_s4 = inlined_call_operand.hbm [shape: f32[16,32], index: 4, kind: input, shape index: {}]   ;;  %s4194_s5 = inlined_call_operand.vmem [shape: f32[1,32], index: 5, kind: input, shape index: {}]   ;;  %s4195_s6 = inlined_call_operand.hbm [shape: f32[32,64], index: 6, kind: input, shape index: {}]   ;;  %s4196_s7 = inlined_call_operand.vmem [shape: f32[1,64], index: 7, kind: input, shape index: {}]   ;;  %s4197_s8 = inlined_call_operand.hbm [shape: f32[64,128], index: 8, kind: input, shape index: {}]   ;;  %s4198_s9 = inlined_call_operand.vmem [shape: f32[1,128], index: 9, kind: input, shape index: {}]   ;;  %s4199_s10 = inlined_call_operand.hbm [shape: f32[2,64,128], index: 10, kind: input, shape index: {}]   ;;  %s4200_s11 = inlined_call_operand.vmem [shape: f32[2,1,128], index: 11, kind: input, shape index: {}]   ;;  %s4201_s12 = inlined_call_operand.vmem [shape: f32[32,128], index: 12, kind: input, shape index: {}]   ;;  %s4202_s13 = inlined_call_operand.vmem [shape: f32[1,128], index: 13, kind: input, shape index: {}]   ;;  %s4203_s14 = inlined_call_operand.hbm [shape: f32[16,128], index: 14, kind: output, shape index: {0}]   ;;  %s4204_s15 = inlined_call_operand.hbm [shape: f32[4,2,32], index: 15, kind: output, shape index: {1}]  }
   0x1   :  { %22 = vsyncpa [#allocation7], 0 }
   0x2   :  { %23 = vsyncpa [#allocation10], 0 }
   0x3   :  { %24 = vsyncpa [#allocation13], 0 }
   0x4   :  { %25 = vsyncpa [#allocation5], 0 }
   0x5   :  { %26 = vsyncpa [#allocation16], 0  ;;  %s3515_s18 = smov [#allocation6]   ;;  %s3516_s20 = smov [#allocation9]  }
   0x6   :  { %s46_s19 = sshll.u32 %s3515_s18, 4  ;;  %s74_s21 = sshll.u32 %s3516_s20, 4  ;;  %s47_s19 = int_to_ptr.vmem [resolvable:$true] %s46_s19  ;;  %s3613_s21 = int_to_ptr.vmem [resolvable:$true] %s74_s21 }
   0x7   :  { %s3327_s24 = scalar_lea.hbm %s4191_s2, 256 }
   0x8   :  { %p3328_p0 = scmp.ne.s32.totalorder %s4191_s2, %s3327_s24  ;;  %p3331_p1 = scmp.lt.u32.totalorder %s3327_s24, %s4191_s2 }
   0xa   :  { %p3333_p2 = pnand %p3331_p1, %p3328_p0 }
   0xc   :  { %3336 = shalt.err (!%p3333_p2)
}
   0xd   :  { %s3337_s29 = scalar_lea.vmem %s47_s19, 256  ;;  %p3342_p4 = scmp.lt.s32.totalorder %s47_s19, %s47_s19 }
   0xe   :  { %p3338_p3 = scmp.ne.s32.totalorder %s47_s19, %s3337_s29  ;;  %p3343_p5 = scmp.lt.s32.totalorder %s3337_s29, %s3337_s29 }
  0x10   :  { %p3344_p6 = por %p3343_p5, %p3342_p4 }
  0x12   :  { %p3345_p7 = pnand %p3344_p6, %p3338_p3 }
  0x14   :  { %3348 = shalt.err (!%p3345_p7)
}
  0x15   :  { %s3517_s30 = smov 128   ;;  %s3518_s16 = smov 8  }
  0x16   :  { %52 = dma.hbm_to_vmem [thread:$0]  %s4191_s2, 256, %s47_s19, [#allocation7], %s3517_s30, %s3517_s30, %s3518_s16  }
  0x17   :  { %s3349_s23 = scalar_lea.hbm %s4195_s6, 512 }
  0x18   :  { %p3350_p8 = scmp.ne.s32.totalorder %s4195_s6, %s3349_s23  ;;  %p3353_p9 = scmp.lt.u32.totalorder %s3349_s23, %s4195_s6 }
  0x1a   :  { %p3355_p10 = pnand %p3353_p9, %p3350_p8 }
  0x1c   :  { %3358 = shalt.err (!%p3355_p10)
}
  0x1d   :  { %s3359_s28 = scalar_lea.vmem %s3613_s21, 512  ;;  %p3364_p12 = scmp.lt.s32.totalorder %s3613_s21, %s3613_s21 }
  0x1e   :  { %p3360_p11 = scmp.ne.s32.totalorder %s3613_s21, %s3359_s28  ;;  %p3365_p13 = scmp.lt.s32.totalorder %s3359_s28, %s3359_s28 }
  0x20   :  { %p3366_p0 = por %p3365_p13, %p3364_p12 }
  0x22   :  { %p3367_p1 = pnand %p3366_p0, %p3360_p11 }
  0x24   :  { %3370 = shalt.err (!%p3367_p1)
}
  0x25   :  { %80 = dma.hbm_to_vmem [thread:$0]  %s4195_s6, 512, %s3613_s21, [#allocation10], %s3517_s30, %s3517_s30, %s3518_s16  }
  0x26   :  { %s3519_s29 = smov [#allocation3]   ;;  %s3520_s18 = smov [#allocation8]  }
  0x27   :  { %s32_s17 = sshll.u32 %s3519_s29, 4  ;;  %s60_s20 = sshll.u32 %s3520_s18, 4  ;;  %s33_s17 = int_to_ptr.vmem [resolvable:$true] %s32_s17  ;;  %s3650_s20 = int_to_ptr.vmem [resolvable:$true] %s60_s20 }
  0x28   :  { %s3371_s24 = scalar_lea.hbm %s4189_s0, 256 }
  0x29   :  { %p3372_p2 = scmp.ne.s32.totalorder %s4189_s0, %s3371_s24  ;;  %p3375_p3 = scmp.lt.u32.totalorder %s3371_s24, %s4189_s0 }
  0x2b   :  { %p3377_p4 = pnand %p3375_p3, %p3372_p2 }
  0x2d   :  { %3380 = shalt.err (!%p3377_p4)
}
  0x2e   :  { %s3381_s6 = scalar_lea.vmem %s33_s17, 256  ;;  %p3386_p6 = scmp.lt.s32.totalorder %s33_s17, %s33_s17 }
  0x2f   :  { %p3382_p5 = scmp.ne.s32.totalorder %s33_s17, %s3381_s6  ;;  %p3387_p7 = scmp.lt.s32.totalorder %s3381_s6, %s3381_s6 }
  0x31   :  { %p3388_p8 = por %p3387_p7, %p3386_p6 }
  0x33   :  { %p3389_p9 = pnand %p3388_p8, %p3382_p5 }
  0x35   :  { %3392 = shalt.err (!%p3389_p9)
}
  0x36   :  { %38 = dma.hbm_to_vmem [thread:$0]  %s4189_s0, 256, %s33_s17, [#allocation4], %s3517_s30, %s3517_s30, %s3518_s16  }
  0x37   :  { %s3393_s18 = scalar_lea.hbm %s4193_s4, 256 }
  0x38   :  { %p3394_p10 = scmp.ne.s32.totalorder %s4193_s4, %s3393_s18  ;;  %p3397_p11 = scmp.lt.u32.totalorder %s3393_s18, %s4193_s4 }
  0x3a   :  { %p3399_p12 = pnand %p3397_p11, %p3394_p10 }
  0x3c   :  { %3402 = shalt.err (!%p3399_p12)
}
  0x3d   :  { %s3403_s26 = scalar_lea.vmem %s3650_s20, 256  ;;  %p3408_p0 = scmp.lt.s32.totalorder %s3650_s20, %s3650_s20 }
  0x3e   :  { %p3404_p13 = scmp.ne.s32.totalorder %s3650_s20, %s3403_s26  ;;  %p3409_p1 = scmp.lt.s32.totalorder %s3403_s26, %s3403_s26 }
  0x40   :  { %p3410_p2 = por %p3409_p1, %p3408_p0 }
  0x42   :  { %p3411_p3 = pnand %p3410_p2, %p3404_p13 }
  0x44   :  { %3414 = shalt.err (!%p3411_p3)
}
  0x45   :  { %66 = dma.hbm_to_vmem [thread:$0]  %s4193_s4, 256, %s3650_s20, [#allocation7], %s3517_s30, %s3517_s30, %s3518_s16  }
  0x46   :  { %s3521_s27 = smov [#allocation11]   ;;  %s3522_s6 = smov [#allocation12]  }
  0x47   :  { %s88_s28 = sshll.u32 %s3521_s27, 4  ;;  %s102_s21 = sshll.u32 %s3522_s6, 4  ;;  %s89_s28 = int_to_ptr.vmem [resolvable:$true] %s88_s28  ;;  %s3687_s21 = int_to_ptr.vmem [resolvable:$true] %s102_s21 }
  0x48   :  { %s3415_s29 = scalar_lea.hbm %s4197_s8, 1024 }
  0x49   :  { %p3416_p4 = scmp.ne.s32.totalorder %s4197_s8, %s3415_s29  ;;  %p3419_p5 = scmp.lt.u32.totalorder %s3415_s29, %s4197_s8 }
  0x4b   :  { %p3421_p6 = pnand %p3419_p5, %p3416_p4 }
  0x4d   :  { %3424 = shalt.err (!%p3421_p6)
}
  0x4e   :  { %s3425_s4 = scalar_lea.vmem %s89_s28, 1024  ;;  %p3430_p8 = scmp.lt.s32.totalorder %s89_s28, %s89_s28 }
  0x4f   :  { %p3426_p7 = scmp.ne.s32.totalorder %s89_s28, %s3425_s4  ;;  %p3431_p9 = scmp.lt.s32.totalorder %s3425_s4, %s3425_s4 }
  0x51   :  { %p3432_p10 = por %p3431_p9, %p3430_p8 }
  0x53   :  { %p3433_p11 = pnand %p3432_p10, %p3426_p7 }
  0x55   :  { %3436 = shalt.err (!%p3433_p11)
}
  0x56   :  { %94 = dma.hbm_to_vmem [thread:$0]  %s4197_s8, 1024, %s89_s28, [#allocation10], %s3517_s30, %s3517_s30, %s3518_s16  }
  0x57   :  { %s3437_s17 = scalar_lea.hbm %s4199_s10, 2048 }
  0x58   :  { %p3438_p12 = scmp.ne.s32.totalorder %s4199_s10, %s3437_s17  ;;  %p3441_p13 = scmp.lt.u32.totalorder %s3437_s17, %s4199_s10 }
  0x5a   :  { %p3443_p0 = pnand %p3441_p13, %p3438_p12 }
  0x5c   :  { %3446 = shalt.err (!%p3443_p0)
}
  0x5d   :  { %s3447_s29 = scalar_lea.vmem %s3687_s21, 2048  ;;  %p3452_p2 = scmp.lt.s32.totalorder %s3687_s21, %s3687_s21 }
  0x5e   :  { %p3448_p1 = scmp.ne.s32.totalorder %s3687_s21, %s3447_s29  ;;  %p3453_p3 = scmp.lt.s32.totalorder %s3447_s29, %s3447_s29 }
  0x60   :  { %p3454_p4 = por %p3453_p3, %p3452_p2 }
  0x62   :  { %p3455_p5 = pnand %p3454_p4, %p3448_p1 }
  0x64   :  { %3458 = shalt.err (!%p3455_p5)
}
  0x65   :  { %108 = dma.hbm_to_vmem [thread:$0]  %s4199_s10, 2048, %s3687_s21, [#allocation13], %s3517_s30, %s3517_s30, %s3518_s16  }
  0x66   :  { %3503 = dma.done.wait [#allocation4], 256  }
  0x67   :  { %3504 = vsyncadd [#allocation4], 4294967040 }
  0x68   :  { %3505 = dma.done.wait [#allocation7], 512  }
  0x69   :  { %3506 = vsyncadd [#allocation7], 4294966784 }
  0x6a   :  { %3507 = dma.done.wait [#allocation10], 1536  }
  0x6b   :  { %3508 = vsyncadd [#allocation10], 4294965760 }
  0x6c   :  { %3509 = dma.done.wait [#allocation13], 2048  }
  0x6d   :  { %3510 = vsyncadd [#allocation13], 4294965248  ;;  %v3523_v0 = vmov 0.0|0.0   ;;  %vm3524_vm0 = vmmov 0   ;;  %v3525_v1 = vmov 0.0   ;;  %vm151_vm1 = vcmask 1043456  }
  0x6e   :  { %3067 = vmatprep.subr.bf16.mxu0 %v3523_v0  ;;  %2774 = vmatprep.mubr.msk.f32.mxu0 %vm3524_vm0, %v3525_v1  ;;  %vm144_vm2 = vcmask 97280   ;;  %vm3526_vm3 = vmmov 1   ;;  %v135_v2 = vld [vmem:[#allocation6] sm:$0xff]  ;;  %v136_v3 = vld [vmem:[#allocation6 + $0x8] sm:$0xf]  ;;  %v133_v4 = vld [vmem:[#allocation3] sm:$0xff] }
  0x6f   :  { %vm3059_vm4 = vmpackc.low %vm151_vm1, %vm3526_vm3  ;;  %v3058_v5 = vpack.c.bf16 %v136_v3, %v135_v2  ;;  %2756 = vmatprep.mubr.msk.f32.mxu1 %vm144_vm2, %v133_v4  ;;  %v233_v6 = vld [vmem:[#allocation8] sm:$0xff]  ;;  %v234_v7 = vld [vmem:[#allocation8 + $0x8] sm:$0xff]  ;;  %vm242_vm5 = vcmask 130048   ;;  %vm328_vm6 = vcmask 261120   ;;  %vm418_vm7 = vcmask 523264   ;;  %s3527_s25 = smov 96  }
  0x70   :  { %v134_v8 = vld [vmem:[#allocation3 + $0x8] sm:$0xff]  ;;  %v3065_v9 = vpack.c.bf16 %v234_v7, %v233_v6  ;;  %v232_v10 = vld [vmem:[%s4190_s1] sm:$0x3]  ;;  %v318_v12 = vld [vmem:[#allocation9 + $0x8] sm:$0xff]  ;;  %vm497_vm8 = vcmask 1040384   ;;  %s3529_s26 = smov 32  }
  0x71   :  { %3060 = vmatprep.subr.msk.bf16.mxu1 %vm3059_vm4, %v3058_v5  ;;  %v317_v11 = vld [vmem:[#allocation9] sm:$0xff]  ;;  %v319_v14 = vld [vmem:[#allocation9 + $0x10] sm:$0xff]  ;;  %v320_v15 = vld [vmem:[#allocation9 + $0x18] sm:$0xff]  ;;  %vm2507_vm12 = vcmask 261126   ;;  %vm831_vm13 = vcmask 254976  }
  0x72   :  { %3063 = vmatpush3.bf16.msk.msra.mxu1 %vm3059_vm4, %v3058_v5  ;;  %v3068_v13 = vpack.c.bf16 %v318_v12, %v317_v11  ;;  %v3071_v16 = vpack.c.bf16 %v320_v15, %v319_v14  ;;  %v505_v17 = vld [vmem:[#allocation12] sm:$0xff]  ;;  %v506_v18 = vld [vmem:[#allocation12 + $0x8] sm:$0xff]  ;;  %v405_v22 = vld [vmem:[#allocation11 + $0x10] sm:$0xff]  ;;  %v601_v11 = vlaneseq }
  0x73   :  { %3064 = vmatprep.subr.bf16.mxu1 %v3523_v0  ;;  %v3085_v19 = vpack.c.bf16 %v506_v18, %v505_v17  ;;  %v403_v20 = vld [vmem:[#allocation11] sm:$0xff]  ;;  %v404_v21 = vld [vmem:[#allocation11 + $0x8] sm:$0xff]  ;;  %v406_v24 = vld [vmem:[#allocation11 + $0x18] sm:$0xff] }
  0x74   :  { %3069 = vmatpush3.bf16.msra.mxu0 %v3068_v13  ;;  %v3074_v23 = vpack.c.bf16 %v404_v21, %v403_v20  ;;  %v3077_v25 = vpack.c.bf16 %v406_v24, %v405_v22  ;;  %v407_v26 = vld [vmem:[#allocation11 + $0x20] sm:$0xff]  ;;  %v408_v27 = vld [vmem:[#allocation11 + $0x28] sm:$0xff]  ;;  %v507_v35 = vld [vmem:[#allocation12 + $0x10] sm:$0xff]  ;;  %v602_v12 = vand.u32 127, %v601_v11 }
  0x75   :  { %2757 = vmatmul.mubr.msk.f32.vlgmr.msra.gmra.mrb[0].mxu1 %vm144_vm2, %v134_v8  ;;  %3070 = vmatprep.subr.bf16.mxu0 %v3523_v0  ;;  %v3080_v28 = vpack.c.bf16 %v408_v27, %v407_v26  ;;  %v2559_v30 = vld [vmem:[%s4192_s3] ss:$0 sm:$0xff]  ;;  %v508_v36 = vld [vmem:[#allocation12 + $0x18] sm:$0xff]  ;;  %v409_v44 = vld [vmem:[#allocation11 + $0x30] sm:$0xff] }
  0x76   :  { %3066 = vmatpush3.bf16.msra.mxu1 %v3065_v9  ;;  %2763 = vmatprep.mubr.msk.f32.mxu1 %vm3524_vm0, %v3525_v1  ;;  %v2563_v32 = vld [vmem:[%s4194_s5] ss:$0 sm:$0xff]  ;;  %v3089_v40 = vpack.c.bf16 %v508_v36, %v507_v35  ;;  %v410_v45 = vld [vmem:[#allocation11 + $0x38] sm:$0xff]  ;;  %v510_v57 = vld [vmem:[#allocation12 + $0x28] sm:$0xff]  ;;  %vm603_vm9 = vcmp.ge.s32.totalorder %v602_v12, 64  ;;  %vm604_vm10 = vcmp.lt.s32.totalorder %v602_v12, 96 }
  0x77   :  { %3073 = vmatprep.subr.bf16.mxu1 %v3523_v0  ;;  %v3083_v46 = vpack.c.bf16 %v410_v45, %v409_v44  ;;  %v2565_v47 = vld [vmem:[%s4196_s7] ss:$0 sm:$0xff]  ;;  %v511_v58 = vld [vmem:[#allocation12 + $0x30] sm:$0xff]  ;;  %v512_v60 = vld [vmem:[#allocation12 + $0x38] sm:$0xff] }
  0x78   :  { %3072 = vmatpush3.bf16.msra.mxu0 %v3071_v16  ;;  %v2569_v52 = vld [vmem:[%s4200_s11] ss:$0 sm:$0xff]  ;;  %v3767_v61 = vpack.c.bf16 %v512_v60, %v511_v58  ;;  %vm3788_vm11 = vmand %vm603_vm9, %vm604_vm10  ;;  %v720_v36 = vld [vmem:[#allocation12 + $0x70] sm:$0xff] }
  0x79   :  { %2764 = vmatmul.mubr.msk.f32.vlgmr.msra.gmra.mrb[2].mxu1 %vm242_vm5, %v232_v10  ;;  %3086 = vmatprep.subr.bf16.mxu0 %v3085_v19  ;;  %v509_v56 = vld [vmem:[#allocation12 + $0x20] sm:$0xff] }
  0x7a   :  { %2793 = vmatprep.mubr.msk.f32.mxu1 %vm3524_vm0, %v3525_v1  ;;  %3075 = vmatpush3.bf16.msra.mxu1 %v3074_v23  ;;  %v3764_v59 = vpack.c.bf16 %v510_v57, %v509_v56  ;;  %v2567_v62 = vld [vmem:[%s4198_s9] ss:$0 sm:$0xff]  ;;  %s3528_s9 = smov 64   ;;  %v3845_v45 = vld [vmem:[%s4200_s11 + $0x1] ss:$0 sm:$0xff] }
  0x7b   :  { %3076 = vmatprep.subr.bf16.mxu1 %v3523_v0  ;;  %v714_v27 = vld [vmem:[#allocation12 + $0x40] sm:$0xff] }
  0x7e   :  { %3078 = vmatpush3.bf16.msra.mxu1 %v3077_v25 }
  0x7f   :  { %3079 = vmatprep.subr.bf16.mxu1 %v3523_v0 }
  0x82   :  { %3081 = vmatpush3.bf16.msra.mxu1 %v3080_v28  ;;  %v715_v28 = vld [vmem:[#allocation12 + $0x48] sm:$0xff] }
  0x83   :  { %3082 = vmatprep.subr.bf16.mxu1 %v3523_v0 }
  0x86   :  { %3084 = vmatpush3.bf16.msra.mxu1 %v3083_v46 }
  0x87   :  { %3099 = vmatprep.subr.bf16.mxu1 %v3523_v0 }
 0x148   :  { %v2758_v29 = vpop.f32.mrb[0].mxu1 }
 0x149   :  { %v221_v31 = vpop.f32.mrb[1].mxu1  ;;  %v227_v42 = vadd.f32 %v2758_v29, %v2559_v30  ;;  %v716_v29 = vld [vmem:[#allocation12 + $0x50] sm:$0xff] }
 0x14a   :  { %v222_v33 = vadd.f32 %v2559_v30, %v221_v31  ;;  %v3804_v30 = vpack.c.bf16 %v715_v28, %v714_v27  ;;  %v717_v31 = vld [vmem:[#allocation12 + $0x58] sm:$0xff] }
 0x14b   :  { %v231_v43 = vmax.f32 %v227_v42, 0.0 }
 0x14c   :  { %v312_v34 = vpop.f32.mrb[2].mxu1  ;;  %v230_v41 = vmax.f32 %v222_v33, 0.0  ;;  %v718_v33 = vld [vmem:[#allocation12 + $0x60] sm:$0xff] }
 0x14d   :  { %v313_v37 = vadd.f32 %v2563_v32, %v312_v34  ;;  %v2765_v38 = vpop.f32.mrb[3].mxu1  ;;  %v3807_v32 = vpack.c.bf16 %v717_v31, %v716_v29  ;;  %v719_v34 = vld [vmem:[#allocation12 + $0x68] sm:$0xff] }
 0x14e   :  { %v3811_v35 = vpack.c.bf16 %v719_v34, %v718_v33 }
 0x14f   :  { %v316_v39 = vmax.f32 %v313_v37, 0.0  ;;  %v721_v37 = vld [vmem:[#allocation12 + $0x78] sm:$0xff] }
 0x151   :  { %2775 = vmatmul.mubr.msk.f32.vlgmr.msra.gmra.mrb[0].mxu0 %vm328_vm6, %v316_v39  ;;  %v3816_v39 = vpack.c.bf16 %v721_v37, %v720_v36 }
 0x152   :  { %3088 = vmatpush3.bf16.msra.mxu0 %v3085_v19  ;;  %2804 = vmatprep.mubr.msk.f32.mxu0 %vm328_vm6, %v230_v41 }
 0x153   :  { %3090 = vmatprep.subr.bf16.mxu0 %v3089_v40 }
 0x156   :  { %3092 = vmatpush3.bf16.msra.mxu0 %v3089_v40 }
 0x157   :  { %3093 = vmatprep.subr.bf16.mxu0 %v3523_v0 }
 0x159   :  { %2805 = vmatmul.mubr.msk.f32.vlgmr.msra.gmra.mrb[2].mxu0 %vm328_vm6, %v231_v43 }
 0x15a   :  { %2815 = vmatprep.mubr.msk.f32.mxu0 %vm3524_vm0, %v3525_v1  ;;  %3095 = vmatpush3.bf16.msra.mxu0 %v3764_v59 }
 0x15b   :  { %3096 = vmatprep.subr.bf16.mxu0 %v3523_v0 }
 0x15e   :  { %3098 = vmatpush3.bf16.msra.mxu0 %v3767_v61 }
 0x15f   :  { %3111 = vmatprep.subr.bf16.mxu0 %v3523_v0 }
 0x224   :  { %v398_v48 = vpop.f32.mrb[0].mxu0 }
 0x225   :  { %v399_v49 = vadd.f32 %v2565_v47, %v398_v48  ;;  %v2776_v50 = vpop.f32.mrb[1].mxu0 }
 0x227   :  { %v402_v51 = vmax.f32 %v399_v49, 0.0 }
 0x229   :  { %2794 = vmatmul.mubr.msk.f32.vlgmr.msra.gmra.mrb[4].mxu1 %vm418_vm7, %v402_v51 }
 0x22a   :  { %2834 = vmatprep.mubr.msk.f32.mxu1 %vm3524_vm0, %v3525_v1  ;;  %3101 = vmatpush3.bf16.msra.mxu1 %v3804_v30 }
 0x22b   :  { %3102 = vmatprep.subr.bf16.mxu1 %v3523_v0 }
 0x22c   :  { %v2806_v53 = vpop.f32.mrb[2].mxu0 }
 0x22d   :  { %v3762_v54 = vadd.f32 %v2806_v53, %v2569_v52  ;;  %v592_v55 = vpop.f32.mrb[3].mxu0 }
 0x22e   :  { %v3785_v7 = vadd.f32 %v2569_v52, %v592_v55  ;;  %3104 = vmatpush3.bf16.msra.mxu1 %v3807_v32 }
 0x22f   :  { %3105 = vmatprep.subr.bf16.mxu1 %v3523_v0 }
 0x232   :  { %3107 = vmatpush3.bf16.msra.mxu1 %v3811_v35 }
 0x233   :  { %3108 = vmatprep.subr.bf16.mxu1 %v3523_v0 }
 0x236   :  { %3110 = vmatpush3.bf16.msra.mxu1 %v3816_v39 }
 0x237   :  { %3129 = vmatprep.subr.bf16.mxu1 %v3523_v0 }
 0x2fc   :  { %v488_v63 = vpop.f32.mrb[4].mxu1 }
 0x2fd   :  { %v489_v2 = vadd.f32 %v2567_v62, %v488_v63  ;;  %v2795_v3 = vpop.f32.mrb[5].mxu1 }
 0x2ff   :  { %v493_v4 = vrot.slane %v489_v2, 7  ;;  %v499_v19 = vrot.slane %v489_v2, 1 }
 0x301   :  { %494 = vrot.lane.b32.xlu0 %v493_v4, %s3527_s25 }
 0x305   :  { %501 = vrot.lane.b32.xlu0 %v489_v2, %s3527_s25 }
 0x373   :  { %v495_v5 = vpop.permute.xlu0 %494 }
 0x374   :  { %v498_v6 = vsel %vm497_vm8, %v489_v2, %v495_v5 }
 0x375   :  { %2816 = vmatmul.mubr.msk.f32.vlgmr.msra.gmra.mrb[4].mxu0 %vm328_vm6, %v498_v6 }
 0x376   :  { %3113 = vmatpush3.bf16.msra.mxu0 %v3764_v59  ;;  %2845 = vmatprep.mubr.msk.f32.mxu0 %vm3524_vm0, %v3525_v1 }
 0x377   :  { %3114 = vmatprep.subr.bf16.mxu0 %v3523_v0  ;;  %v502_v18 = vpop.permute.xlu0 %501 }
 0x378   :  { %v3796_v20 = vsel %vm497_vm8, %v499_v19, %v502_v18 }
 0x37a   :  { %3116 = vmatpush3.bf16.msra.mxu0 %v3767_v61 }
 0x37b   :  { %3117 = vmatprep.subr.bf16.mxu0 %v3523_v0 }
 0x448   :  { %v675_v8 = vpop.f32.mrb[4].mxu0 }
 0x449   :  { %v679_v9 = vadd.f32 %v675_v8, %v3785_v7  ;;  %v2817_v10 = vpop.f32.mrb[5].mxu0 }
 0x44b   :  { %3263 = vtanh.f32 %v679_v9 }
 0x455   :  { %v3264_v13 = vpop.eup %3263 }
 0x456   :  { %v681_v14 = vmul.f32 0.5, %v3264_v13 }
 0x458   :  { %v682_v16 = vadd.f32 0.5, %v681_v14 }
 0x45a   :  { %v683_v17 = vsel %vm3788_vm11, %v3264_v13, %v682_v16 }
 0x45b   :  { %690 = vrot.lane.b32.xlu1 %v683_v17, %s3528_s9 }
 0x45f   :  { %685 = vrot.lane.b32.xlu1 %v3796_v20, %s3529_s26 }
 0x4cd   :  { %v691_v21 = vpop.permute.xlu1 %690 }
 0x4ce   :  { %v693_v22 = vmul.f32 %v691_v21, %v683_v17 }
 0x4d0   :  { %695 = vrot.lane.b32.xlu0 %v693_v22, %s3529_s26 }
 0x4d1   :  { %v686_v23 = vpop.permute.xlu1 %685 }
 0x4d2   :  { %v688_v24 = vmul.f32 %v686_v23, %v683_v17 }
 0x542   :  { %v696_v25 = vpop.permute.xlu0 %695 }
 0x543   :  { %v3801_v26 = vadd.f32 %v696_v25, %v688_v24 }
 0x545   :  { %3265 = vtanh.f32 %v3801_v26  ;;  %v914_v8 = vrot.slane %v3801_v26, 6 }
 0x54f   :  { %v3266_v38 = vpop.eup %3265 }
 0x550   :  { %701 = vrot.lane.b32.xlu1 %v3266_v38, %s3528_s9 }
 0x554   :  { %709 = vrot.lane.b32.xlu1 %v498_v6, %s3527_s25 }
 0x5c2   :  { %v702_v40 = vpop.permute.xlu1 %701 }
 0x5c3   :  { %v704_v41 = vmul.f32 %v702_v40, %v683_v17 }
 0x5c5   :  { %706 = vrot.lane.b32.xlu0 %v704_v41, %s3529_s26 }
 0x5c6   :  { %v710_v42 = vpop.permute.xlu1 %709 }
 0x637   :  { %v707_v43 = vpop.permute.xlu0 %706 }
 0x638   :  { %v712_v44 = vsel %vm328_vm6, %v707_v43, %v710_v42  ;;  %2846 = vmatmul.mubr.msk.f32.vlgmr.msra.gmra.mrb[6].mxu0 %vm328_vm6, %v707_v43 }
 0x639   :  { %2835 = vmatmul.mubr.msk.f32.vlgmr.msra.gmra.mrb[6].mxu1 %vm418_vm7, %v712_v44  ;;  %3119 = vmatpush3.bf16.msra.mxu0 %v3804_v30 }
 0x63a   :  { %3120 = vmatprep.subr.bf16.mxu0 %v3523_v0  ;;  %3131 = vmatpush3.bf16.msra.mxu1 %v3764_v59 }
 0x63b   :  { %3132 = vmatprep.subr.bf16.mxu1 %v3523_v0  ;;  %2864 = vmatprep.mubr.msk.f32.mxu0 %vm3524_vm0, %v3525_v1 }
 0x63c   :  { %2875 = vmatprep.mubr.msk.f32.mxu1 %vm3524_vm0, %v3525_v1 }
 0x63d   :  { %3122 = vmatpush3.bf16.msra.mxu0 %v3807_v32 }
 0x63e   :  { %3123 = vmatprep.subr.bf16.mxu0 %v3523_v0  ;;  %3134 = vmatpush3.bf16.msra.mxu1 %v3767_v61 }
 0x63f   :  { %3135 = vmatprep.subr.bf16.mxu1 %v3523_v0 }
 0x641   :  { %3125 = vmatpush3.bf16.msra.mxu0 %v3811_v35 }
 0x642   :  { %3126 = vmatprep.subr.bf16.mxu0 %v3523_v0 }
 0x645   :  { %3128 = vmatpush3.bf16.msra.mxu0 %v3816_v39 }
 0x646   :  { %3147 = vmatprep.subr.bf16.mxu0 %v3523_v0 }
 0x70b   :  { %v901_v46 = vpop.f32.mrb[6].mxu0 }
 0x70c   :  { %v906_v47 = vrot.slane %v901_v46, 6  ;;  %v799_v48 = vpop.f32.mrb[6].mxu1  ;;  %v2847_v49 = vpop.f32.mrb[7].mxu0 }
 0x70d   :  { %v800_v50 = vadd.f32 %v3845_v45, %v799_v48  ;;  %v2836_v51 = vpop.f32.mrb[7].mxu1 }
 0x70e   :  { %v908_v52 = vadd.f32 %v906_v47, %v3785_v7 }
 0x70f   :  { %3267 = vtanh.f32 %v800_v50 }
 0x710   :  { %3269 = vtanh.f32 %v908_v52 }
 0x719   :  { %v3268_v53 = vpop.eup %3267 }
 0x71a   :  { %v3270_v55 = vpop.eup %3269  ;;  %v804_v56 = vmul.f32 0.5, %v3268_v53 }
 0x71b   :  { %v910_v57 = vmul.f32 0.5, %v3270_v55 }
 0x71c   :  { %v805_v58 = vadd.f32 0.5, %v804_v56 }
 0x71d   :  { %v911_v60 = vadd.f32 0.5, %v910_v57 }
 0x71e   :  { %v806_v62 = vsel %vm3788_vm11, %v3268_v53, %v805_v58 }
 0x71f   :  { %812 = vrot.lane.b32.xlu0 %v806_v62, %s3528_s9  ;;  %v912_v63 = vsel %vm3788_vm11, %v3270_v55, %v911_v60 }
 0x720   :  { %918 = vrot.lane.b32.xlu1 %v912_v63, %s3528_s9  ;;  %v916_v11 = vmul.f32 %v914_v8, %v912_v63 }
 0x723   :  { %807 = vrot.lane.b32.xlu0 %v3796_v20, %s3527_s25 }
 0x791   :  { %v813_v2 = vpop.permute.xlu0 %812 }
 0x792   :  { %v815_v3 = vmul.f32 %v813_v2, %v806_v62  ;;  %v919_v4 = vpop.permute.xlu1 %918 }
 0x793   :  { %v921_v5 = vmul.f32 %v919_v4, %v912_v63 }
 0x794   :  { %817 = vrot.lane.b32.xlu1 %v815_v3, %s3529_s26 }
 0x795   :  { %923 = vrot.lane.b32.xlu0 %v921_v5, %s3529_s26  ;;  %v808_v6 = vpop.permute.xlu0 %807 }
 0x796   :  { %v810_v9 = vmul.f32 %v808_v6, %v806_v62 }
 0x806   :  { %v818_v10 = vpop.permute.xlu1 %817 }
 0x807   :  { %v3860_v12 = vadd.f32 %v818_v10, %v810_v9  ;;  %v924_v13 = vpop.permute.xlu0 %923 }
 0x808   :  { %v3862_v14 = vadd.f32 %v924_v13, %v916_v11 }
 0x809   :  { %3271 = vtanh.f32 %v3860_v12 }
 0x80a   :  { %3273 = vtanh.f32 %v3862_v14  ;;  %v1141_v53 = vrot.slane %v3862_v14, 6 }
 0x813   :  { %v3272_v16 = vpop.eup %3271 }
 0x814   :  { %v3274_v17 = vpop.eup %3273  ;;  %823 = vrot.lane.b32.xlu1 %v3272_v16, %s3528_s9 }
 0x815   :  { %929 = vrot.lane.b32.xlu0 %v3274_v17, %s3528_s9 }
 0x886   :  { %v824_v18 = vpop.permute.xlu1 %823 }
 0x887   :  { %v3868_v19 = vmul.f32 %v824_v18, %v806_v62  ;;  %v930_v20 = vpop.permute.xlu0 %929 }
 0x888   :  { %v932_v21 = vmul.f32 %v930_v20, %v912_v63 }
 0x889   :  { %v937_v22 = vrot.slane %v3868_v19, 6 }
 0x88a   :  { %934 = vrot.lane.b32.xlu1 %v932_v21, %s3529_s26  ;;  %v1057_v23 = vrot.slane %v932_v21, 2 }
 0x88b   :  { %938 = vrot.lane.b32.xlu0 %v937_v22, %s3528_s9 }
 0x88e   :  { %1058 = vrot.lane.b32.xlu1 %v1057_v23, %s3529_s26 }
 0x8fc   :  { %v935_v24 = vpop.permute.xlu1 %934 }
 0x8fd   :  { %v939_v25 = vpop.permute.xlu0 %938 }
 0x8fe   :  { %v941_v26 = vsel %vm328_vm6, %v935_v24, %v939_v25 }
 0x8ff   :  { %v958_v27 = vrot.slane %v941_v26, 2 }
 0x900   :  { %v1059_v28 = vpop.permute.xlu1 %1058 }
 0x901   :  { %2865 = vmatmul.mubr.msk.f32.vlgmr.msra.gmra.mrb[8].mxu0 %vm418_vm7, %v958_v27  ;;  %2876 = vmatmul.mubr.msk.f32.vlgmr.msra.gmra.mrb[8].mxu1 %vm328_vm6, %v1059_v28 }
 0x902   :  { %3137 = vmatpush3.bf16.msra.mxu1 %v3804_v30  ;;  %3149 = vmatpush3.bf16.msra.mxu0 %v3764_v59 }
 0x903   :  { %3138 = vmatprep.subr.bf16.mxu1 %v3523_v0  ;;  %3150 = vmatprep.subr.bf16.mxu0 %v3523_v0 }
 0x904   :  { %2894 = vmatprep.mubr.msk.f32.mxu1 %vm3524_vm0, %v3525_v1  ;;  %2905 = vmatprep.mubr.msk.f32.mxu0 %vm3524_vm0, %v3525_v1 }
 0x906   :  { %3140 = vmatpush3.bf16.msra.mxu1 %v3807_v32  ;;  %3152 = vmatpush3.bf16.msra.mxu0 %v3767_v61 }
 0x907   :  { %3141 = vmatprep.subr.bf16.mxu1 %v3523_v0  ;;  %3153 = vmatprep.subr.bf16.mxu0 %v3523_v0 }
 0x90a   :  { %3143 = vmatpush3.bf16.msra.mxu1 %v3811_v35 }
 0x90b   :  { %3144 = vmatprep.subr.bf16.mxu1 %v3523_v0 }
 0x90e   :  { %3146 = vmatpush3.bf16.msra.mxu1 %v3816_v39 }
 0x90f   :  { %3165 = vmatprep.subr.bf16.mxu1 %v3523_v0 }
 0x9d4   :  { %v1027_v29 = vpop.f32.mrb[8].mxu0  ;;  %v1128_v31 = vpop.f32.mrb[8].mxu1 }
 0x9d5   :  { %v1028_v33 = vadd.f32 %v3845_v45, %v1027_v29  ;;  %v1133_v34 = vrot.slane %v1128_v31, 4  ;;  %v2866_v36 = vpop.f32.mrb[9].mxu0  ;;  %v2877_v37 = vpop.f32.mrb[9].mxu1 }
 0x9d7   :  { %3275 = vtanh.f32 %v1028_v33  ;;  %v1135_v38 = vadd.f32 %v1133_v34, %v3785_v7 }
 0x9d9   :  { %3277 = vtanh.f32 %v1135_v38 }
 0x9e1   :  { %v3276_v40 = vpop.eup %3275 }
 0x9e2   :  { %v1032_v41 = vmul.f32 0.5, %v3276_v40 }
 0x9e3   :  { %v3278_v42 = vpop.eup %3277 }
 0x9e4   :  { %v1033_v43 = vadd.f32 0.5, %v1032_v41  ;;  %v1137_v44 = vmul.f32 0.5, %v3278_v42 }
 0x9e6   :  { %v1034_v46 = vsel %vm3788_vm11, %v3276_v40, %v1033_v43  ;;  %v1138_v47 = vadd.f32 0.5, %v1137_v44 }
 0x9e7   :  { %1037 = vrot.lane.b32.xlu0 %v1034_v46, %s3528_s9  ;;  %v1035_v55 = vmul.f32 %v1034_v46, %v3860_v12 }
 0x9e8   :  { %v1139_v48 = vsel %vm3788_vm11, %v3278_v42, %v1138_v47 }
 0x9e9   :  { %1145 = vrot.lane.b32.xlu1 %v1139_v48, %s3528_s9  ;;  %v1143_v58 = vmul.f32 %v1141_v53, %v1139_v48 }
 0xa59   :  { %v1038_v49 = vpop.permute.xlu0 %1037 }
 0xa5a   :  { %v1040_v50 = vmul.f32 %v1038_v49, %v1034_v46 }
 0xa5b   :  { %v1146_v51 = vpop.permute.xlu1 %1145 }
 0xa5c   :  { %v1148_v52 = vmul.f32 %v1146_v51, %v1139_v48  ;;  %1042 = vrot.lane.b32.xlu0 %v1040_v50, %s3529_s26 }
 0xa5e   :  { %1150 = vrot.lane.b32.xlu1 %v1148_v52, %s3529_s26 }
 0xace   :  { %v1043_v56 = vpop.permute.xlu0 %1042 }
 0xacf   :  { %v3905_v57 = vadd.f32 %v1043_v56, %v1035_v55 }
 0xad0   :  { %v1151_v60 = vpop.permute.xlu1 %1150 }
 0xad1   :  { %3279 = vtanh.f32 %v3905_v57  ;;  %v3908_v62 = vadd.f32 %v1151_v60, %v1143_v58 }
 0xad3   :  { %3281 = vtanh.f32 %v3908_v62  ;;  %v1368_v40 = vrot.slane %v3908_v62, 6 }
 0xadb   :  { %v3280_v63 = vpop.eup %3279 }
 0xadc   :  { %1048 = vrot.lane.b32.xlu0 %v3280_v63, %s3528_s9 }
 0xadd   :  { %v3282_v2 = vpop.eup %3281 }
 0xade   :  { %1156 = vrot.lane.b32.xlu1 %v3282_v2, %s3528_s9 }
 0xb4e   :  { %v1049_v3 = vpop.permute.xlu0 %1048 }
 0xb4f   :  { %v3913_v4 = vmul.f32 %v1049_v3, %v1034_v46 }
 0xb50   :  { %v1157_v5 = vpop.permute.xlu1 %1156 }
 0xb51   :  { %v1164_v6 = vrot.slane %v3913_v4, 4  ;;  %v1159_v8 = vmul.f32 %v1157_v5, %v1139_v48 }
 0xb53   :  { %1165 = vrot.lane.b32.xlu1 %v1164_v6, %s3528_s9  ;;  %1161 = vrot.lane.b32.xlu0 %v1159_v8, %s3529_s26  ;;  %v1284_v9 = vrot.slane %v1159_v8, 4 }
 0xb57   :  { %1285 = vrot.lane.b32.xlu0 %v1284_v9, %s3529_s26 }
 0xbc5   :  { %v1162_v10 = vpop.permute.xlu0 %1161  ;;  %v1166_v11 = vpop.permute.xlu1 %1165 }
 0xbc6   :  { %v1168_v12 = vsel %vm328_vm6, %v1162_v10, %v1166_v11 }
 0xbc7   :  { %v1185_v13 = vrot.slane %v1168_v12, 4 }
 0xbc9   :  { %v1286_v14 = vpop.permute.xlu0 %1285  ;;  %2895 = vmatmul.mubr.msk.f32.vlgmr.msra.gmra.mrb[10].mxu1 %vm418_vm7, %v1185_v13 }
 0xbca   :  { %2906 = vmatmul.mubr.msk.f32.vlgmr.msra.gmra.mrb[10].mxu0 %vm328_vm6, %v1286_v14  ;;  %3167 = vmatpush3.bf16.msra.mxu1 %v3764_v59 }
 0xbcb   :  { %3155 = vmatpush3.bf16.msra.mxu0 %v3804_v30  ;;  %3168 = vmatprep.subr.bf16.mxu1 %v3523_v0 }
 0xbcc   :  { %3156 = vmatprep.subr.bf16.mxu0 %v3523_v0  ;;  %2924 = vmatprep.mubr.msk.f32.mxu0 %vm3524_vm0, %v3525_v1 }
 0xbcd   :  { %2935 = vmatprep.mubr.msk.f32.mxu1 %vm3524_vm0, %v3525_v1 }
 0xbce   :  { %3170 = vmatpush3.bf16.msra.mxu1 %v3767_v61 }
 0xbcf   :  { %3158 = vmatpush3.bf16.msra.mxu0 %v3807_v32  ;;  %3171 = vmatprep.subr.bf16.mxu1 %v3523_v0 }
 0xbd0   :  { %3159 = vmatprep.subr.bf16.mxu0 %v3523_v0 }
 0xbd3   :  { %3161 = vmatpush3.bf16.msra.mxu0 %v3811_v35 }
 0xbd4   :  { %3162 = vmatprep.subr.bf16.mxu0 %v3523_v0 }
 0xbd7   :  { %3164 = vmatpush3.bf16.msra.mxu0 %v3816_v39 }
 0xbd8   :  { %3183 = vmatprep.subr.bf16.mxu0 %v3523_v0 }
 0xc9c   :  { %v1254_v16 = vpop.f32.mrb[10].mxu1 }
 0xc9d   :  { %v1255_v17 = vadd.f32 %v3845_v45, %v1254_v16  ;;  %v2896_v18 = vpop.f32.mrb[11].mxu1  ;;  %v1355_v20 = vpop.f32.mrb[10].mxu0 }
 0xc9e   :  { %v1360_v21 = vrot.slane %v1355_v20, 2  ;;  %v2907_v22 = vpop.f32.mrb[11].mxu0 }
 0xc9f   :  { %3283 = vtanh.f32 %v1255_v17 }
 0xca0   :  { %v1362_v23 = vadd.f32 %v1360_v21, %v3785_v7 }
 0xca2   :  { %3285 = vtanh.f32 %v1362_v23 }
 0xca9   :  { %v3284_v24 = vpop.eup %3283 }
 0xcaa   :  { %v1259_v25 = vmul.f32 0.5, %v3284_v24 }
 0xcac   :  { %v3286_v26 = vpop.eup %3285  ;;  %v1260_v27 = vadd.f32 0.5, %v1259_v25 }
 0xcad   :  { %v1364_v28 = vmul.f32 0.5, %v3286_v26 }
 0xcae   :  { %v1261_v29 = vsel %vm3788_vm11, %v3284_v24, %v1260_v27 }
 0xcaf   :  { %1264 = vrot.lane.b32.xlu1 %v1261_v29, %s3528_s9  ;;  %v1365_v31 = vadd.f32 0.5, %v1364_v28  ;;  %v1262_v38 = vmul.f32 %v1261_v29, %v3905_v57 }
 0xcb1   :  { %v1366_v33 = vsel %vm3788_vm11, %v3286_v26, %v1365_v31 }
 0xcb2   :  { %1372 = vrot.lane.b32.xlu0 %v1366_v33, %s3528_s9  ;;  %v1370_v43 = vmul.f32 %v1368_v40, %v1366_v33 }
 0xd21   :  { %v1265_v34 = vpop.permute.xlu1 %1264 }
 0xd22   :  { %v1267_v36 = vmul.f32 %v1265_v34, %v1261_v29 }
 0xd24   :  { %v1373_v7 = vpop.permute.xlu0 %1372  ;;  %1269 = vrot.lane.b32.xlu1 %v1267_v36, %s3529_s26 }
 0xd25   :  { %v1375_v37 = vmul.f32 %v1373_v7, %v1366_v33 }
 0xd27   :  { %1377 = vrot.lane.b32.xlu0 %v1375_v37, %s3529_s26 }
 0xd96   :  { %v1270_v41 = vpop.permute.xlu1 %1269 }
 0xd97   :  { %v3950_v42 = vadd.f32 %v1270_v41, %v1262_v38 }
 0xd99   :  { %3287 = vtanh.f32 %v3950_v42  ;;  %v1378_v44 = vpop.permute.xlu0 %1377 }
 0xd9a   :  { %v3953_v46 = vadd.f32 %v1378_v44, %v1370_v43 }
 0xd9c   :  { %3289 = vtanh.f32 %v3953_v46  ;;  %v1592_v23 = vrot.slane %v3953_v46, 6 }
 0xda3   :  { %v3288_v47 = vpop.eup %3287 }
 0xda4   :  { %1275 = vrot.lane.b32.xlu1 %v3288_v47, %s3528_s9 }
 0xda6   :  { %v3290_v48 = vpop.eup %3289 }
 0xda7   :  { %1383 = vrot.lane.b32.xlu0 %v3290_v48, %s3528_s9 }
 0xe16   :  { %v1276_v49 = vpop.permute.xlu1 %1275 }
 0xe17   :  { %v3958_v50 = vmul.f32 %v1276_v49, %v1261_v29 }
 0xe19   :  { %v1391_v51 = vrot.slane %v3958_v50, 2  ;;  %v1384_v52 = vpop.permute.xlu0 %1383 }
 0xe1a   :  { %v1386_v53 = vmul.f32 %v1384_v52, %v1366_v33 }
 0xe1b   :  { %1392 = vrot.lane.b32.xlu0 %v1391_v51, %s3528_s9 }
 0xe1c   :  { %1388 = vrot.lane.b32.xlu1 %v1386_v53, %s3529_s26  ;;  %v1511_v55 = vrot.slane %v1386_v53, 6 }
 0xe20   :  { %1512 = vrot.lane.b32.xlu1 %v1511_v55, %s3529_s26 }
 0xe8d   :  { %v1393_v56 = vpop.permute.xlu0 %1392 }
 0xe8e   :  { %v1389_v57 = vpop.permute.xlu1 %1388 }
 0xe8f   :  { %v1395_v58 = vsel %vm328_vm6, %v1389_v57, %v1393_v56 }
 0xe90   :  { %v1412_v60 = vrot.slane %v1395_v58, 6 }
 0xe92   :  { %2925 = vmatmul.mubr.msk.f32.vlgmr.msra.gmra.mrb[12].mxu0 %vm418_vm7, %v1412_v60  ;;  %v1513_v62 = vpop.permute.xlu1 %1512 }
 0xe93   :  { %2936 = vmatmul.mubr.msk.f32.vlgmr.msra.gmra.mrb[12].mxu1 %vm328_vm6, %v1513_v62  ;;  %3185 = vmatpush3.bf16.msra.mxu0 %v3764_v59 }
 0xe94   :  { %3173 = vmatpush3.bf16.msra.mxu1 %v3804_v30  ;;  %3186 = vmatprep.subr.bf16.mxu0 %v3523_v0 }
 0xe95   :  { %3174 = vmatprep.subr.bf16.mxu1 %v3523_v0  ;;  %2965 = vmatprep.mubr.msk.f32.mxu0 %vm3524_vm0, %v3525_v1 }
 0xe96   :  { %2954 = vmatprep.mubr.msk.f32.mxu1 %vm3524_vm0, %v3525_v1 }
 0xe97   :  { %3188 = vmatpush3.bf16.msra.mxu0 %v3767_v61 }
 0xe98   :  { %3176 = vmatpush3.bf16.msra.mxu1 %v3807_v32  ;;  %3189 = vmatprep.subr.bf16.mxu0 %v3523_v0 }
 0xe99   :  { %3177 = vmatprep.subr.bf16.mxu1 %v3523_v0 }
 0xe9c   :  { %3179 = vmatpush3.bf16.msra.mxu1 %v3811_v35 }
 0xe9d   :  { %3180 = vmatprep.subr.bf16.mxu1 %v3523_v0 }
 0xea0   :  { %3182 = vmatpush3.bf16.msra.mxu1 %v3816_v39 }
 0xea1   :  { %3201 = vmatprep.subr.bf16.mxu1 %v3523_v0 }
 0xf65   :  { %v1481_v63 = vpop.f32.mrb[12].mxu0 }
 0xf66   :  { %v1482_v2 = vadd.f32 %v3845_v45, %v1481_v63  ;;  %v2926_v3 = vpop.f32.mrb[13].mxu0  ;;  %v1582_v5 = vpop.f32.mrb[12].mxu1 }
 0xf67   :  { %v1586_v6 = vadd.f32 %v1582_v5, %v3762_v54  ;;  %v2937_v8 = vpop.f32.mrb[13].mxu1 }
 0xf68   :  { %3291 = vtanh.f32 %v1482_v2 }
 0xf69   :  { %3293 = vtanh.f32 %v1586_v6 }
 0xf72   :  { %v3292_v9 = vpop.eup %3291 }
 0xf73   :  { %v3294_v10 = vpop.eup %3293  ;;  %v1486_v11 = vmul.f32 0.5, %v3292_v9 }
 0xf74   :  { %v1588_v12 = vmul.f32 0.5, %v3294_v10 }
 0xf75   :  { %v1487_v13 = vadd.f32 0.5, %v1486_v11 }
 0xf76   :  { %v1589_v14 = vadd.f32 0.5, %v1588_v12 }
 0xf77   :  { %v1488_v16 = vsel %vm3788_vm11, %v3292_v9, %v1487_v13 }
 0xf78   :  { %1491 = vrot.lane.b32.xlu0 %v1488_v16, %s3528_s9  ;;  %v1590_v17 = vsel %vm3788_vm11, %v3294_v10, %v1589_v14  ;;  %v1489_v24 = vmul.f32 %v1488_v16, %v3950_v42 }
 0xf79   :  { %1596 = vrot.lane.b32.xlu1 %v1590_v17, %s3528_s9  ;;  %v1594_v26 = vmul.f32 %v1592_v23, %v1590_v17 }
 0xfea   :  { %v1492_v18 = vpop.permute.xlu0 %1491 }
 0xfeb   :  { %v1494_v20 = vmul.f32 %v1492_v18, %v1488_v16  ;;  %v1597_v21 = vpop.permute.xlu1 %1596 }
 0xfec   :  { %v1599_v22 = vmul.f32 %v1597_v21, %v1590_v17 }
 0xfed   :  { %1496 = vrot.lane.b32.xlu0 %v1494_v20, %s3529_s26 }
 0xfee   :  { %1601 = vrot.lane.b32.xlu1 %v1599_v22, %s3529_s26 }
0x105f   :  { %v1497_v25 = vpop.permute.xlu0 %1496 }
0x1060   :  { %v1499_v27 = vadd.f32 %v1497_v25, %v1489_v24  ;;  %v1602_v28 = vpop.permute.xlu1 %1601 }
0x1061   :  { %v1604_v29 = vadd.f32 %v1602_v28, %v1594_v26 }
0x1062   :  { %3295 = vtanh.f32 %v1499_v27 }
0x1063   :  { %3297 = vtanh.f32 %v1604_v29  ;;  %v1814_v5 = vrot.slane %v1604_v29, 6 }
0x106c   :  { %v3296_v31 = vpop.eup %3295 }
0x106d   :  { %v3298_v33 = vpop.eup %3297  ;;  %1502 = vrot.lane.b32.xlu0 %v3296_v31, %s3528_s9 }
0x106e   :  { %1607 = vrot.lane.b32.xlu1 %v3298_v33, %s3528_s9 }
0x10df   :  { %v1503_v34 = vpop.permute.xlu0 %1502 }
0x10e0   :  { %v3997_v36 = vmul.f32 %v1503_v34, %v1488_v16  ;;  %v1608_v7 = vpop.permute.xlu1 %1607 }
0x10e1   :  { %v1610_v37 = vmul.f32 %v1608_v7, %v1590_v17 }
0x10e2   :  { %1615 = vrot.lane.b32.xlu1 %v3997_v36, %s3528_s9 }
0x10e3   :  { %1612 = vrot.lane.b32.xlu0 %v1610_v37, %s3529_s26 }
0x1154   :  { %v1616_v38 = vpop.permute.xlu1 %1615 }
0x1155   :  { %v1613_v40 = vpop.permute.xlu0 %1612 }
0x1156   :  { %v1618_v41 = vsel %vm328_vm6, %v1613_v40, %v1616_v38  ;;  %2966 = vmatmul.mubr.msk.f32.vlgmr.msra.gmra.mrb[14].mxu0 %vm328_vm6, %v1613_v40 }
0x1157   :  { %2955 = vmatmul.mubr.msk.f32.vlgmr.msra.gmra.mrb[14].mxu1 %vm418_vm7, %v1618_v41  ;;  %3191 = vmatpush3.bf16.msra.mxu0 %v3804_v30 }
0x1158   :  { %3192 = vmatprep.subr.bf16.mxu0 %v3523_v0  ;;  %3203 = vmatpush3.bf16.msra.mxu1 %v3764_v59 }
0x1159   :  { %3204 = vmatprep.subr.bf16.mxu1 %v3523_v0  ;;  %2984 = vmatprep.mubr.msk.f32.mxu0 %vm3524_vm0, %v3525_v1 }
0x115a   :  { %2995 = vmatprep.mubr.msk.f32.mxu1 %vm3524_vm0, %v3525_v1 }
0x115b   :  { %3194 = vmatpush3.bf16.msra.mxu0 %v3807_v32 }
0x115c   :  { %3195 = vmatprep.subr.bf16.mxu0 %v3523_v0  ;;  %3206 = vmatpush3.bf16.msra.mxu1 %v3767_v61 }
0x115d   :  { %3207 = vmatprep.subr.bf16.mxu1 %v3523_v0 }
0x115f   :  { %3197 = vmatpush3.bf16.msra.mxu0 %v3811_v35 }
0x1160   :  { %3198 = vmatprep.subr.bf16.mxu0 %v3523_v0 }
0x1163   :  { %3200 = vmatpush3.bf16.msra.mxu0 %v3816_v39 }
0x1164   :  { %3219 = vmatprep.subr.bf16.mxu0 %v3523_v0 }
0x1229   :  { %v1801_v42 = vpop.f32.mrb[14].mxu0 }
0x122a   :  { %v1806_v43 = vrot.slane %v1801_v42, 6  ;;  %v1703_v44 = vpop.f32.mrb[14].mxu1  ;;  %v2967_v46 = vpop.f32.mrb[15].mxu0 }
0x122b   :  { %v1704_v47 = vadd.f32 %v3845_v45, %v1703_v44  ;;  %v2956_v48 = vpop.f32.mrb[15].mxu1 }
0x122c   :  { %v1808_v49 = vadd.f32 %v1806_v43, %v3762_v54 }
0x122d   :  { %3299 = vtanh.f32 %v1704_v47 }
0x122e   :  { %3301 = vtanh.f32 %v1808_v49 }
0x1237   :  { %v3300_v51 = vpop.eup %3299 }
0x1238   :  { %v3302_v52 = vpop.eup %3301  ;;  %v1708_v53 = vmul.f32 0.5, %v3300_v51 }
0x1239   :  { %v1810_v55 = vmul.f32 0.5, %v3302_v52 }
0x123a   :  { %v1709_v56 = vadd.f32 0.5, %v1708_v53 }
0x123b   :  { %v1811_v57 = vadd.f32 0.5, %v1810_v55 }
0x123c   :  { %v1710_v58 = vsel %vm3788_vm11, %v3300_v51, %v1709_v56 }
0x123d   :  { %1713 = vrot.lane.b32.xlu0 %v1710_v58, %s3528_s9  ;;  %v1812_v60 = vsel %vm3788_vm11, %v3302_v52, %v1811_v57  ;;  %v1711_v6 = vmul.f32 %v1710_v58, %v1499_v27 }
0x123e   :  { %1818 = vrot.lane.b32.xlu1 %v1812_v60, %s3528_s9  ;;  %v1816_v9 = vmul.f32 %v1814_v5, %v1812_v60 }
0x12af   :  { %v1714_v62 = vpop.permute.xlu0 %1713 }
0x12b0   :  { %v1716_v63 = vmul.f32 %v1714_v62, %v1710_v58  ;;  %v1819_v2 = vpop.permute.xlu1 %1818 }
0x12b1   :  { %v1821_v3 = vmul.f32 %v1819_v2, %v1812_v60 }
0x12b2   :  { %1718 = vrot.lane.b32.xlu0 %v1716_v63, %s3529_s26 }
0x12b3   :  { %1823 = vrot.lane.b32.xlu1 %v1821_v3, %s3529_s26 }
0x1324   :  { %v1719_v8 = vpop.permute.xlu0 %1718 }
0x1325   :  { %v4031_v10 = vadd.f32 %v1719_v8, %v1711_v6  ;;  %v1824_v11 = vpop.permute.xlu1 %1823 }
0x1326   :  { %v4033_v12 = vadd.f32 %v1824_v11, %v1816_v9 }
0x1327   :  { %3303 = vtanh.f32 %v4031_v10 }
0x1328   :  { %3305 = vtanh.f32 %v4033_v12  ;;  %v2041_v46 = vrot.slane %v4033_v12, 6 }
0x1331   :  { %v3304_v13 = vpop.eup %3303 }
0x1332   :  { %v3306_v14 = vpop.eup %3305  ;;  %1724 = vrot.lane.b32.xlu0 %v3304_v13, %s3528_s9 }
0x1333   :  { %1829 = vrot.lane.b32.xlu1 %v3306_v14, %s3528_s9 }
0x13a4   :  { %v1725_v16 = vpop.permute.xlu0 %1724 }
0x13a5   :  { %v4039_v17 = vmul.f32 %v1725_v16, %v1710_v58  ;;  %v1830_v18 = vpop.permute.xlu1 %1829 }
0x13a6   :  { %v1832_v20 = vmul.f32 %v1830_v18, %v1812_v60 }
0x13a7   :  { %v1837_v21 = vrot.slane %v4039_v17, 6 }
0x13a8   :  { %1834 = vrot.lane.b32.xlu0 %v1832_v20, %s3529_s26  ;;  %v1957_v22 = vrot.slane %v1832_v20, 2 }
0x13a9   :  { %1838 = vrot.lane.b32.xlu1 %v1837_v21, %s3528_s9 }
0x13ac   :  { %1958 = vrot.lane.b32.xlu0 %v1957_v22, %s3529_s26 }
0x141a   :  { %v1835_v23 = vpop.permute.xlu0 %1834 }
0x141b   :  { %v1839_v24 = vpop.permute.xlu1 %1838 }
0x141c   :  { %v1841_v25 = vsel %vm328_vm6, %v1835_v23, %v1839_v24 }
0x141d   :  { %v1858_v26 = vrot.slane %v1841_v25, 2 }
0x141e   :  { %v1959_v27 = vpop.permute.xlu0 %1958 }
0x141f   :  { %2985 = vmatmul.mubr.msk.f32.vlgmr.msra.gmra.mrb[16].mxu0 %vm418_vm7, %v1858_v26  ;;  %2996 = vmatmul.mubr.msk.f32.vlgmr.msra.gmra.mrb[16].mxu1 %vm328_vm6, %v1959_v27 }
0x1420   :  { %3209 = vmatpush3.bf16.msra.mxu1 %v3804_v30  ;;  %3221 = vmatpush3.bf16.msra.mxu0 %v3764_v59 }
0x1421   :  { %3210 = vmatprep.subr.bf16.mxu1 %v3523_v0  ;;  %3222 = vmatprep.subr.bf16.mxu0 %v3523_v0 }
0x1422   :  { %3014 = vmatprep.mubr.msk.f32.mxu1 %vm3524_vm0, %v3525_v1  ;;  %3025 = vmatprep.mubr.msk.f32.mxu0 %vm3524_vm0, %v3525_v1 }
0x1424   :  { %3212 = vmatpush3.bf16.msra.mxu1 %v3807_v32  ;;  %3224 = vmatpush3.bf16.msra.mxu0 %v3767_v61 }
0x1425   :  { %3213 = vmatprep.subr.bf16.mxu1 %v3523_v0  ;;  %3225 = vmatprep.subr.bf16.mxu0 %v3523_v0 }
0x1428   :  { %3215 = vmatpush3.bf16.msra.mxu1 %v3811_v35 }
0x1429   :  { %3216 = vmatprep.subr.bf16.mxu1 %v3523_v0 }
0x142c   :  { %3218 = vmatpush3.bf16.msra.mxu1 %v3816_v39 }
0x14f2   :  { %v1927_v59 = vpop.f32.mrb[16].mxu0  ;;  %v2028_v30 = vpop.f32.mrb[16].mxu1 }
0x14f3   :  { %v1928_v28 = vadd.f32 %v3845_v45, %v1927_v59  ;;  %v2033_v29 = vrot.slane %v2028_v30, 4  ;;  %v2986_v31 = vpop.f32.mrb[17].mxu0  ;;  %v2997_v33 = vpop.f32.mrb[17].mxu1 }
0x14f5   :  { %3307 = vtanh.f32 %v1928_v28  ;;  %v2035_v61 = vadd.f32 %v2033_v29, %v3762_v54 }
0x14f7   :  { %3309 = vtanh.f32 %v2035_v61 }
0x14ff   :  { %v3308_v32 = vpop.eup %3307 }
0x1500   :  { %v1932_v34 = vmul.f32 0.5, %v3308_v32 }
0x1501   :  { %v3310_v7 = vpop.eup %3309 }
0x1502   :  { %v1933_v37 = vadd.f32 0.5, %v1932_v34  ;;  %v2037_v35 = vmul.f32 0.5, %v3310_v7  ;;  %v2296_v34 = vld [vmem:[#allocation12 + $0x40] sm:$0xff] }
0x1504   :  { %v1934_v38 = vsel %vm3788_vm11, %v3308_v32, %v1933_v37  ;;  %v2038_v39 = vadd.f32 0.5, %v2037_v35  ;;  %v2298_v37 = vld [vmem:[#allocation12 + $0x50] sm:$0xff] }
0x1505   :  { %1937 = vrot.lane.b32.xlu1 %v1934_v38, %s3528_s9  ;;  %v1935_v47 = vmul.f32 %v1934_v38, %v4031_v10 }
0x1506   :  { %v2039_v40 = vsel %vm3788_vm11, %v3310_v7, %v2038_v39  ;;  %v2297_v7 = vld [vmem:[#allocation12 + $0x48] sm:$0xff] }
0x1507   :  { %2045 = vrot.lane.b32.xlu0 %v2039_v40, %s3528_s9  ;;  %v2043_v51 = vmul.f32 %v2041_v46, %v2039_v40  ;;  %v3226_v35 = vpack.c.bf16 %v2297_v7, %v2296_v34  ;;  %v2302_v46 = vld [vmem:[#allocation12 + $0x70] sm:$0xff] }
0x1577   :  { %v1938_v41 = vpop.permute.xlu1 %1937 }
0x1578   :  { %v1940_v42 = vmul.f32 %v1938_v41, %v1934_v38  ;;  %v2301_v41 = vld [vmem:[#allocation12 + $0x68] sm:$0xff] }
0x1579   :  { %v2046_v43 = vpop.permute.xlu0 %2045 }
0x157a   :  { %v2048_v44 = vmul.f32 %v2046_v43, %v2039_v40  ;;  %1942 = vrot.lane.b32.xlu1 %v1940_v42, %s3529_s26 }
0x157c   :  { %2050 = vrot.lane.b32.xlu0 %v2048_v44, %s3529_s26 }
0x15ec   :  { %v1943_v48 = vpop.permute.xlu1 %1942 }
0x15ed   :  { %v1945_v49 = vadd.f32 %v1943_v48, %v1935_v47  ;;  %v2303_v47 = vld [vmem:[#allocation12 + $0x78] sm:$0xff] }
0x15ee   :  { %v2051_v52 = vpop.permute.xlu0 %2050  ;;  %v3235_v48 = vpack.c.bf16 %v2303_v47, %v2302_v46 }
0x15ef   :  { %3311 = vtanh.f32 %v1945_v49  ;;  %v2053_v53 = vadd.f32 %v2051_v52, %v2043_v51 }
0x15f1   :  { %3313 = vtanh.f32 %v2053_v53  ;;  %v2268_v28 = vrot.slane %v2053_v53, 6 }
0x15f9   :  { %v3312_v55 = vpop.eup %3311 }
0x15fa   :  { %1948 = vrot.lane.b32.xlu1 %v3312_v55, %s3528_s9 }
0x15fb   :  { %v3314_v56 = vpop.eup %3313 }
0x15fc   :  { %2056 = vrot.lane.b32.xlu0 %v3314_v56, %s3528_s9 }
0x166c   :  { %v1949_v57 = vpop.permute.xlu1 %1948 }
0x166d   :  { %v4077_v58 = vmul.f32 %v1949_v57, %v1934_v38  ;;  %v2299_v38 = vld [vmem:[#allocation12 + $0x58] sm:$0xff] }
0x166e   :  { %v2057_v60 = vpop.permute.xlu0 %2056  ;;  %v3229_v39 = vpack.c.bf16 %v2299_v38, %v2298_v37 }
0x166f   :  { %v2064_v62 = vrot.slane %v4077_v58, 4  ;;  %v2059_v63 = vmul.f32 %v2057_v60, %v2039_v40  ;;  %v2300_v40 = vld [vmem:[#allocation12 + $0x60] sm:$0xff] }
0x1670   :  { %v3232_v43 = vpack.c.bf16 %v2301_v41, %v2300_v40 }
0x1671   :  { %2065 = vrot.lane.b32.xlu0 %v2064_v62, %s3528_s9  ;;  %2061 = vrot.lane.b32.xlu1 %v2059_v63, %s3529_s26  ;;  %v2184_v2 = vrot.slane %v2059_v63, 4  ;;  %v2602_v62 = vld [vmem:[%s4200_s11 + $0x1] ss:$0 sm:$0xff] }
0x1675   :  { %2185 = vrot.lane.b32.xlu1 %v2184_v2, %s3529_s26 }
0x16e3   :  { %v2062_v3 = vpop.permute.xlu1 %2061  ;;  %v2066_v5 = vpop.permute.xlu0 %2065 }
0x16e4   :  { %v2068_v6 = vsel %vm328_vm6, %v2062_v3, %v2066_v5 }
0x16e5   :  { %v2085_v8 = vrot.slane %v2068_v6, 4 }
0x16e7   :  { %v2186_v9 = vpop.permute.xlu1 %2185  ;;  %3015 = vmatmul.mubr.msk.f32.vlgmr.msra.gmra.mrb[18].mxu1 %vm418_vm7, %v2085_v8 }
0x16e8   :  { %3026 = vmatmul.mubr.msk.f32.vlgmr.msra.gmra.mrb[18].mxu0 %vm328_vm6, %v2186_v9 }
0x16e9   :  { %3044 = vmatprep.mubr.msk.f32.mxu0 %vm3524_vm0, %v3525_v1  ;;  %3227 = vmatpush3.bf16.msra.mxu0 %v3226_v35 }
0x16ea   :  { %3228 = vmatprep.subr.bf16.mxu0 %v3523_v0 }
0x16ed   :  { %3230 = vmatpush3.bf16.msra.mxu0 %v3229_v39 }
0x16ee   :  { %3231 = vmatprep.subr.bf16.mxu0 %v3523_v0 }
0x16f1   :  { %3233 = vmatpush3.bf16.msra.mxu0 %v3232_v43 }
0x16f2   :  { %3234 = vmatprep.subr.bf16.mxu0 %v3523_v0 }
0x16f5   :  { %3236 = vmatpush3.bf16.msra.mxu0 %v3235_v48 }
0x17ba   :  { %v2154_v10 = vpop.f32.mrb[18].mxu1 }
0x17bb   :  { %v2155_v11 = vadd.f32 %v3845_v45, %v2154_v10  ;;  %v3016_v12 = vpop.f32.mrb[19].mxu1  ;;  %v2255_v13 = vpop.f32.mrb[18].mxu0 }
0x17bc   :  { %v2260_v14 = vrot.slane %v2255_v13, 2  ;;  %v3027_v16 = vpop.f32.mrb[19].mxu0 }
0x17bd   :  { %3315 = vtanh.f32 %v2155_v11 }
0x17be   :  { %v2262_v18 = vadd.f32 %v2260_v14, %v3762_v54 }
0x17c0   :  { %3317 = vtanh.f32 %v2262_v18 }
0x17c7   :  { %v3316_v20 = vpop.eup %3315 }
0x17c8   :  { %v2159_v21 = vmul.f32 0.5, %v3316_v20 }
0x17ca   :  { %v3318_v22 = vpop.eup %3317  ;;  %v2160_v23 = vadd.f32 0.5, %v2159_v21  ;;  %v2414_v21 = vld [vmem:[%s4201_s12 + $0x8] sm:$0xff] }
0x17cb   :  { %v2264_v24 = vmul.f32 0.5, %v3318_v22 }
0x17cc   :  { %v2161_v25 = vsel %vm3788_vm11, %v3316_v20, %v2160_v23  ;;  %v2413_v20 = vld [vmem:[%s4201_s12] sm:$0xff] }
0x17cd   :  { %2164 = vrot.lane.b32.xlu0 %v2161_v25, %s3528_s9  ;;  %v2265_v1 = vadd.f32 0.5, %v2264_v24  ;;  %v2162_v30 = vmul.f32 %v2161_v25, %v1945_v49 }
0x17cf   :  { %v2266_v45 = vsel %vm3788_vm11, %v3318_v22, %v2265_v1  ;;  %v3237_v22 = vpack.c.bf16 %v2414_v21, %v2413_v20 }
0x17d0   :  { %2272 = vrot.lane.b32.xlu1 %v2266_v45, %s3528_s9  ;;  %v2270_v33 = vmul.f32 %v2268_v28, %v2266_v45 }
0x17d1   :  { %3238 = vmatprep.subr.bf16.mxu1 %v3237_v22 }
0x17d2   :  { %3240 = vmatpush3.bf16.msra.mxu1 %v3237_v22 }
0x183f   :  { %v2165_v26 = vpop.permute.xlu0 %2164 }
0x1840   :  { %v2167_v27 = vmul.f32 %v2165_v26, %v2161_v25 }
0x1842   :  { %v2273_v54 = vpop.permute.xlu1 %2272  ;;  %2169 = vrot.lane.b32.xlu0 %v2167_v27, %s3529_s26 }
0x1843   :  { %v2275_v59 = vmul.f32 %v2273_v54, %v2266_v45 }
0x1845   :  { %2277 = vrot.lane.b32.xlu1 %v2275_v59, %s3529_s26 }
0x18b4   :  { %v2170_v29 = vpop.permute.xlu0 %2169 }
0x18b5   :  { %v2172_v31 = vadd.f32 %v2170_v29, %v2162_v30 }
0x18b7   :  { %3319 = vtanh.f32 %v2172_v31  ;;  %v2278_v61 = vpop.permute.xlu1 %2277 }
0x18b8   :  { %v2280_v32 = vadd.f32 %v2278_v61, %v2270_v33 }
0x18ba   :  { %3321 = vtanh.f32 %v2280_v32 }
0x18c1   :  { %v3320_v42 = vpop.eup %3319 }
0x18c2   :  { %2175 = vrot.lane.b32.xlu0 %v3320_v42, %s3528_s9 }
0x18c4   :  { %v3322_v44 = vpop.eup %3321 }
0x18c5   :  { %2283 = vrot.lane.b32.xlu1 %v3322_v44, %s3528_s9 }
0x1934   :  { %v2176_v49 = vpop.permute.xlu0 %2175 }
0x1935   :  { %v2178_v51 = vmul.f32 %v2176_v49, %v2161_v25 }
0x1937   :  { %v2291_v52 = vrot.slane %v2178_v51, 2  ;;  %v2284_v53 = vpop.permute.xlu1 %2283 }
0x1938   :  { %v2286_v55 = vmul.f32 %v2284_v53, %v2266_v45 }
0x1939   :  { %2292 = vrot.lane.b32.xlu1 %v2291_v52, %s3528_s9 }
0x193a   :  { %2288 = vrot.lane.b32.xlu0 %v2286_v55, %s3529_s26 }
0x19ab   :  { %v2293_v56 = vpop.permute.xlu1 %2292 }
0x19ac   :  { %v2289_v57 = vpop.permute.xlu0 %2288 }
0x19ad   :  { %v2295_v60 = vsel %vm328_vm6, %v2289_v57, %v2293_v56  ;;  %2508 = vst.msk [vmem:[#allocation15 - $0x6] sm:$0xc0] %vm2507_vm12, %v2289_v57 }
0x19ae   :  { %v2312_v0 = vrot.slane %v2295_v60, 6 }
0x19b0   :  { %3045 = vmatmul.mubr.msk.f32.vlgmr.msra.gmra.mrb[20].mxu0 %vm418_vm7, %v2312_v0 }
0x1a83   :  { %v2381_v63 = vpop.f32.mrb[20].mxu0 }
0x1a84   :  { %v2382_v2 = vadd.f32 %v2602_v62, %v2381_v63  ;;  %v3046_v3 = vpop.f32.mrb[21].mxu0 }
0x1a86   :  { %3323 = vtanh.f32 %v2382_v2 }
0x1a90   :  { %v3324_v5 = vpop.eup %3323 }
0x1a91   :  { %v2386_v6 = vmul.f32 0.5, %v3324_v5 }
0x1a93   :  { %v2387_v8 = vadd.f32 0.5, %v2386_v6 }
0x1a95   :  { %v2388_v9 = vsel %vm3788_vm11, %v3324_v5, %v2387_v8 }
0x1a96   :  { %2391 = vrot.lane.b32.xlu0 %v2388_v9, %s3528_s9  ;;  %v2389_v15 = vmul.f32 %v2388_v9, %v2172_v31 }
0x1b08   :  { %v2392_v10 = vpop.permute.xlu0 %2391 }
0x1b09   :  { %v2394_v11 = vmul.f32 %v2392_v10, %v2388_v9 }
0x1b0b   :  { %2396 = vrot.lane.b32.xlu1 %v2394_v11, %s3529_s26 }
0x1b0f   :  { %828 = vrot.lane.b32.xlu1 %v3868_v19, %s3529_s26 }
0x1b13   :  { %1280 = vrot.lane.b32.xlu1 %v3958_v50, %s3529_s26 }
0x1b17   :  { %1729 = vrot.lane.b32.xlu1 %v4039_v17, %s3529_s26 }
0x1b1b   :  { %2180 = vrot.lane.b32.xlu1 %v2178_v51, %s3529_s26 }
0x1b1f   :  { %2510 = vrot.lane.b32.xlu1 %v2280_v32, %s3527_s25 }
0x1b7d   :  { %v2397_v12 = vpop.permute.xlu1 %2396 }
0x1b7e   :  { %v2399_v13 = vadd.f32 %v2397_v12, %v2389_v15 }
0x1b80   :  { %3325 = vtanh.f32 %v2399_v13 }
0x1b81   :  { %v829_v14 = vpop.permute.xlu1 %828 }
0x1b82   :  { %832 = vst.msk [vmem:[#allocation2] sm:$0x3] %vm831_vm13, %v829_v14 }
0x1b85   :  { %v1281_v16 = vpop.permute.xlu1 %1280 }
0x1b86   :  { %1283 = vst.msk [vmem:[#allocation2 + $0x4] sm:$0x3] %vm831_vm13, %v1281_v16 }
0x1b89   :  { %v1730_v19 = vpop.permute.xlu1 %1729 }
0x1b8a   :  { %v3326_v50 = vpop.eup %3325  ;;  %1732 = vst.msk [vmem:[#allocation2 + $0x8] sm:$0x3] %vm831_vm13, %v1730_v19 }
0x1b8b   :  { %2402 = vrot.lane.b32.xlu0 %v3326_v50, %s3528_s9 }
0x1b8d   :  { %v2181_v17 = vpop.permute.xlu1 %2180 }
0x1b8e   :  { %2183 = vst.msk [vmem:[#allocation2 + $0xc] sm:$0x3] %vm831_vm13, %v2181_v17 }
0x1b8f   :  { %1053 = vrot.lane.b32.xlu0 %v3913_v4, %s3529_s26  ;;  %v2415_v4 = vld [vmem:[%s4201_s12 + $0x10] sm:$0xff] }
0x1b91   :  { %v2511_v18 = vpop.permute.xlu1 %2510 }
0x1b92   :  { %2514 = vst.msk [vmem:[#allocation15 - $0x2] sm:$0xc0] %vm2507_vm12, %v2511_v18 }
0x1b93   :  { %1507 = vrot.lane.b32.xlu0 %v3997_v36, %s3529_s26  ;;  %v2416_v36 = vld [vmem:[%s4201_s12 + $0x18] sm:$0xff]  ;;  %s3530_s12 = smov [#allocation15]  }
0x1b94   :  { %s2540_s1 = sshll.u32 %s3530_s12, 4  ;;  %s2541_s1 = int_to_ptr.vmem [resolvable:$true] %s2540_s1 }
0x1b95   :  { %s3459_s18 = scalar_lea.vmem %s2541_s1, 128  ;;  %p3464_p7 = scmp.lt.s32.totalorder %s2541_s1, %s2541_s1 }
0x1b96   :  { %p3460_p6 = scmp.ne.s32.totalorder %s2541_s1, %s3459_s18  ;;  %p3465_p8 = scmp.lt.s32.totalorder %s3459_s18, %s3459_s18 }
0x1b97   :  { %1953 = vrot.lane.b32.xlu0 %v4077_v58, %s3529_s26  ;;  %v3241_v58 = vpack.c.bf16 %v2416_v36, %v2415_v4 }
0x1b98   :  { %p3466_p9 = por %p3465_p8, %p3464_p7 }
0x1b99   :  { %3242 = vmatprep.subr.bf16.mxu1 %v3241_v58 }
0x1b9a   :  { %3244 = vmatpush3.bf16.msra.mxu1 %v3241_v58  ;;  %p3467_p10 = pnand %p3466_p9, %p3460_p6 }
0x1bfd   :  { %v2403_v23 = vpop.permute.xlu0 %2402 }
0x1bfe   :  { %v2405_v24 = vmul.f32 %v2403_v23, %v2388_v9 }
0x1c00   :  { %2407 = vrot.lane.b32.xlu0 %v2405_v24, %s3529_s26 }
0x1c01   :  { %v1054_v25 = vpop.permute.xlu0 %1053 }
0x1c02   :  { %1056 = vst.msk [vmem:[#allocation2 + $0x2] sm:$0x3] %vm831_vm13, %v1054_v25 }
0x1c04   :  { %2518 = vrot.lane.b32.xlu0 %v2399_v13, %s3527_s25 }
0x1c05   :  { %v1508_v1 = vpop.permute.xlu0 %1507 }
0x1c06   :  { %1510 = vst.msk [vmem:[#allocation2 + $0x6] sm:$0x3] %vm831_vm13, %v1508_v1 }
0x1c09   :  { %v1954_v45 = vpop.permute.xlu0 %1953 }
0x1c0a   :  { %1956 = vst.msk [vmem:[#allocation2 + $0xa] sm:$0x3] %vm831_vm13, %v1954_v45 }
0x1c0d   :  { %v2411_v26 = vld [vmem:[#allocation2] sm:$0xff] }
0x1c0e   :  { %3055 = vmatprep.mubr.msk.f32.mxu1 %vm328_vm6, %v2411_v26 }
0x1c72   :  { %v2408_v27 = vpop.permute.xlu0 %2407 }
0x1c73   :  { %2410 = vst.msk [vmem:[#allocation2 + $0xe] sm:$0x3] %vm831_vm13, %v2408_v27  ;;  %2516 = vst.msk [vmem:[#allocation15 + $0x2] sm:$0x3] %vm831_vm13, %v2408_v27 }
0x1c76   :  { %v2519_v54 = vpop.permute.xlu0 %2518 }
0x1c77   :  { %2522 = vst.msk [vmem:[#allocation15 + $0x6] sm:$0x3] %vm831_vm13, %v2519_v54 }
0x1c7a   :  { %v2412_v59 = vld [vmem:[#allocation2 + $0x8] sm:$0xff] }
0x1c7b   :  { %3056 = vmatmul.mubr.msk.f32.vlgmr.msra.gmra.mrb[20].mxu1 %vm328_vm6, %v2412_v59 }
0x1c7c   :  { %3470 = shalt.err (!%p3467_p10)
}
0x1c7d   :  { %s3471_s3 = scalar_lea.hbm %s4204_s15, 128 }
0x1c7e   :  { %p3472_p11 = scmp.ne.s32.totalorder %s4204_s15, %s3471_s3  ;;  %p3475_p12 = scmp.lt.u32.totalorder %s3471_s3, %s4204_s15 }
0x1c80   :  { %p3477_p13 = pnand %p3475_p12, %p3472_p11 }
0x1c82   :  { %3480 = shalt.err (!%p3477_p13)
}
0x1c83   :  { %s3531_s20 = smov 2   ;;  %v2604_v30 = vld [vmem:[%s4202_s13] ss:$0 sm:$0xff]  ;;  %s3532_s27 = smov [#allocation14]  }
0x1c84   :  { %2546 = dma.vmem_to_hbm [thread:$0]  %s2541_s1, 128, %s4204_s15, [#allocation16], %s3529_s26, %s3529_s26, %s3531_s20  }
0x1c85   :  { %s2528_s6 = sshll.u32 %s3532_s27, 4  ;;  %s2529_s6 = int_to_ptr.vmem [resolvable:$true] %s2528_s6 }
0x1c86   :  { %s3481_s11 = scalar_lea.vmem %s2529_s6, 256  ;;  %p3486_p1 = scmp.lt.s32.totalorder %s2529_s6, %s2529_s6 }
0x1c87   :  { %p3482_p0 = scmp.ne.s32.totalorder %s2529_s6, %s3481_s11  ;;  %p3487_p2 = scmp.lt.s32.totalorder %s3481_s11, %s3481_s11 }
0x1c89   :  { %p3488_p3 = por %p3487_p2, %p3486_p1 }
0x1c8b   :  { %p3489_p4 = pnand %p3488_p3, %p3482_p0 }
0x1d4e   :  { %v3057_v28 = vpop.f32.mrb[20].mxu1 }
0x1d4f   :  { %v2502_v29 = vadd.f32 %v3057_v28, %v2604_v30  ;;  %v2496_v31 = vpop.f32.mrb[21].mxu1 }
0x1d50   :  { %v2497_v33 = vadd.f32 %v2604_v30, %v2496_v31 }
0x1d51   :  { %2506 = vst [vmem:[#allocation14 + $0x8] sm:$0xff] %v2502_v29 }
0x1d52   :  { %2505 = vst [vmem:[#allocation14] sm:$0xff] %v2497_v33 }
0x1d53   :  { %3492 = shalt.err (!%p3489_p4)
}
0x1d54   :  { %s3493_s13 = scalar_lea.hbm %s4203_s14, 256 }
0x1d55   :  { %p3494_p5 = scmp.ne.s32.totalorder %s4203_s14, %s3493_s13  ;;  %p3497_p6 = scmp.lt.u32.totalorder %s3493_s13, %s4203_s14 }
0x1d57   :  { %p3499_p7 = pnand %p3497_p6, %p3494_p5 }
0x1d59   :  { %3502 = shalt.err (!%p3499_p7)
}
0x1d5a   :  { %2534 = dma.vmem_to_hbm [thread:$0]  %s2529_s6, 256, %s4203_s14, [#allocation5], %s3517_s30, %s3517_s30, %s3518_s16  }
0x1d5b   :  { %3511 = dma.done.wait [#allocation5], 256  }
0x1d5c   :  { %3512 = vsyncadd [#allocation5], 4294967040 }
0x1d5d   :  { %3513 = dma.done.wait [#allocation16], 128  }
0x1d5e   :  { %3514 = vsyncadd [#allocation16], 4294967168 }
0x1d5f   :  { %2553 = vsyncpa [#allocation4], 1 }
0x1d60   :  { %2554 = vsyncpa [#allocation7], 1 }
0x1d61   :  { %2555 = vsyncpa [#allocation10], 1 }
0x1d62   :  { %2556 = vsyncpa [#allocation13], 1 }
0x1d63   :  { %2557 = vsyncpa [#allocation5], 1 }
0x1d64   :  { %2558 = vsyncpa [#allocation16], 1 }

</bundles_post_ra>
